<compile_context>
chip_gen: v7x
topology: tpu7x:2x2x1
jax: 0.10.0
libtpu: 0.0.40
codegen_flags: <defaults>
</compile_context>

<pallas_src>
import functools
import math

import jax
import jax.numpy as jnp
from jax.experimental import pallas as pl
from jax.experimental.pallas import tpu as pltpu

# ----------------------------------------------------------------------------
# Config (small synthetic BERT)
# ----------------------------------------------------------------------------
VOCAB = 100
MAX_LEN = 8          # max_length (tokenizer pad/trim length)
HIDDEN = 32
HEADS = 4
HEAD_DIM = HIDDEN // HEADS
FFN = 64
LAYERS = 2
LN_EPS = 1e-12       # BERT LayerNorm eps

VMEM_SPEC = pl.BlockSpec(memory_space=pltpu.MemorySpace.VMEM)
PARAMS_PER_LAYER = 12  # wqkv, bqkv, wo, bo, ln1_g, ln1_b, w1, b1, w2, b2, ln2_g, ln2_b


# ----------------------------------------------------------------------------
# In-kernel helpers (operate on values, all f32)
# ----------------------------------------------------------------------------
def _layer_norm(x, g, b):
    mu = jnp.mean(x, axis=-1, keepdims=True)
    xc = x - mu
    var = jnp.mean(xc * xc, axis=-1, keepdims=True)
    return xc * jax.lax.rsqrt(var + LN_EPS) * g + b


def _gelu(x):
    # exact (erf) GELU, as used by BERT
    return 0.5 * x * (1.0 + jax.lax.erf(x * (1.0 / math.sqrt(2.0))))


# ----------------------------------------------------------------------------
# Single fused Pallas kernel: embeddings -> N encoder layers -> pooler
# ----------------------------------------------------------------------------
def _encoder_kernel(*refs, num_layers, batch, seq_len):
    (ids_r_ref, ids_c_ref, bidx_r_ref, bidx_c_ref, wemb_ref, pos_type_ref,
     emb_g_ref, emb_b_ref, *rest) = refs
    layer_refs = rest[: PARAMS_PER_LAYER * num_layers]
    pool_w_ref, pool_b_ref, o_ref = rest[PARAMS_PER_LAYER * num_layers:]

    bs = batch * seq_len
    d, nh, dh = HIDDEN, HEADS, HEAD_DIM

    ids_r = ids_r_ref[...]                       # (bs, 1)  int32
    ids_c = ids_c_ref[...]                       # (1, bs)  int32
    bidx_r = bidx_r_ref[...]                     # (bs, 1)  int32
    bidx_c = bidx_c_ref[...]                     # (1, bs)  int32

    # --- embedding lookup as one-hot MXU matmul (gather stays in-kernel) ----
    vocab_iota = jax.lax.broadcasted_iota(jnp.int32, (bs, VOCAB), 1)
    onehot = (vocab_iota == ids_r).astype(jnp.float32)          # (bs, VOCAB)
    x = jnp.dot(onehot, wemb_ref[...].astype(jnp.float32),
                preferred_element_type=jnp.float32)             # (bs, d)
    x = x + pos_type_ref[...].astype(jnp.float32)
    h = _layer_norm(x, emb_g_ref[...].astype(jnp.float32),
                    emb_b_ref[...].astype(jnp.float32))

    # --- attention mask: same batch AND key is not a padding token ----------
    key_valid = ids_c != 0                                      # (1, bs)
    same_batch = bidx_r == bidx_c                               # (bs, bs)
    allowed = jnp.logical_and(same_batch, key_valid)            # (bs, bs)
    mask_bias = jnp.where(allowed, 0.0, -1e30).astype(jnp.float32)

    scale = 1.0 / math.sqrt(dh)

    # --- encoder layers (statically unrolled; weights stay resident in VMEM)
    for layer in range(num_layers):
        (wqkv, bqkv, wo, bo, ln1_g, ln1_b, w1, b1, w2, b2, ln2_g, ln2_b) = [
            layer_refs[PARAMS_PER_LAYER * layer + i][...].astype(jnp.float32)
            for i in range(PARAMS_PER_LAYER)
        ]

        # fused QKV projection: one matmul, lane-width 3*d output
        qkv = jnp.dot(h, wqkv, preferred_element_type=jnp.float32) + bqkv
        q = qkv[:, 0:d] * scale                  # fold 1/sqrt(dh) into q
        k = qkv[:, d:2 * d]
        v = qkv[:, 2 * d:3 * d]

        ctx_heads = []
        for head in range(nh):
            sl = slice(head * dh, (head + 1) * dh)
            qh, kh, vh = q[:, sl], k[:, sl], v[:, sl]
            # contract last dims -> q @ k^T without an explicit XLU transpose
            s = jax.lax.dot_general(qh, kh, (((1,), (1,)), ((), ())),
                                    preferred_element_type=jnp.float32)
            s = s + mask_bias                    # (bs, bs)
            m = jnp.max(s, axis=-1, keepdims=True)
            p = jnp.exp(s - m)
            denom = jnp.sum(p, axis=-1, keepdims=True)
            p = p * pl.reciprocal(denom, approx=True)
            ctx_heads.append(jnp.dot(p, vh, preferred_element_type=jnp.float32))
        ctx = jnp.concatenate(ctx_heads, axis=-1)                # (bs, d)

        attn_out = jnp.dot(ctx, wo, preferred_element_type=jnp.float32) + bo
        h = _layer_norm(h + attn_out, ln1_g, ln1_b)

        f = jnp.dot(h, w1, preferred_element_type=jnp.float32) + b1
        f = _gelu(f)
        f = jnp.dot(f, w2, preferred_element_type=jnp.float32) + b2
        h = _layer_norm(h + f, ln2_g, ln2_b)

    # --- pooler: select [CLS] rows via a tiny selection matmul, then tanh ---
    row_iota = jax.lax.broadcasted_iota(jnp.int32, (batch, bs), 0)
    col_iota = jax.lax.broadcasted_iota(jnp.int32, (batch, bs), 1)
    sel = (col_iota == row_iota * seq_len).astype(jnp.float32)   # (batch, bs)
    cls = jnp.dot(sel, h, preferred_element_type=jnp.float32)    # (batch, d)
    pooled = jnp.tanh(
        jnp.dot(cls, pool_w_ref[...].astype(jnp.float32),
                preferred_element_type=jnp.float32)
        + pool_b_ref[...].astype(jnp.float32))
    o_ref[...] = pooled.astype(o_ref.dtype)


# ----------------------------------------------------------------------------
# Parameter init (deterministic, synthetic — mimics AutoModel.from_pretrained)
# ----------------------------------------------------------------------------
def init_params(key):
    def nrm(k, shape):
        return 0.02 * jax.random.normal(k, shape, dtype=jnp.float32)

    keys = iter(jax.random.split(key, 8 + 12 * LAYERS))
    params = {
        "word_emb": nrm(next(keys), (VOCAB, HIDDEN)),
        "pos_emb": nrm(next(keys), (MAX_LEN, HIDDEN)),
        "type_emb": nrm(next(keys), (2, HIDDEN)),
        "emb_ln_g": jnp.ones((HIDDEN,), jnp.float32),
        "emb_ln_b": jnp.zeros((HIDDEN,), jnp.float32),
        "pool_w": nrm(next(keys), (HIDDEN, HIDDEN)),
        "pool_b": jnp.zeros((HIDDEN,), jnp.float32),
        "layers": [],
    }
    for _ in range(LAYERS):
        params["layers"].append({
            "wq": nrm(next(keys), (HIDDEN, HIDDEN)), "bq": jnp.zeros((HIDDEN,), jnp.float32),
            "wk": nrm(next(keys), (HIDDEN, HIDDEN)), "bk": jnp.zeros((HIDDEN,), jnp.float32),
            "wv": nrm(next(keys), (HIDDEN, HIDDEN)), "bv": jnp.zeros((HIDDEN,), jnp.float32),
            "wo": nrm(next(keys), (HIDDEN, HIDDEN)), "bo": jnp.zeros((HIDDEN,), jnp.float32),
            "ln1_g": jnp.ones((HIDDEN,), jnp.float32), "ln1_b": jnp.zeros((HIDDEN,), jnp.float32),
            "w1": nrm(next(keys), (HIDDEN, FFN)), "b1": jnp.zeros((FFN,), jnp.float32),
            "w2": nrm(next(keys), (FFN, HIDDEN)), "b2": jnp.zeros((HIDDEN,), jnp.float32),
            "ln2_g": jnp.ones((HIDDEN,), jnp.float32), "ln2_b": jnp.zeros((HIDDEN,), jnp.float32),
        })
    return params


# ----------------------------------------------------------------------------
# "Tokenizer" + forward (== TransformerEncoder.forward -> pooler_output)
# ----------------------------------------------------------------------------
def synthetic_tokenize(labels, max_length=MAX_LEN):
    # TODO(synk): real subword tokenization (HuggingFace tokenizer, pure string
    # processing) has no Pallas equivalent; replaced by a deterministic
    # hash-based char->id mapping with [CLS]=1 / [SEP]=2 / pad=0.
    ids = []
    for lab in labels:
        toks = [1] + [(ord(c) % (VOCAB - 4)) + 4 for c in str(lab)][: max_length - 2] + [2]
        toks = toks + [0] * (max_length - len(toks))
        ids.append(toks)
    return jnp.asarray(ids, dtype=jnp.int32)


@jax.jit
def transformer_encoder_forward(params, token_ids):
    b, s = token_ids.shape
    bs = b * s
    d = HIDDEN

    ids_flat = token_ids.reshape(bs).astype(jnp.int32)
    ids_r = ids_flat.reshape(bs, 1)
    ids_c = ids_flat.reshape(1, bs)
    bidx = jnp.repeat(jnp.arange(b, dtype=jnp.int32), s)
    bidx_r = bidx.reshape(bs, 1)
    bidx_c = bidx.reshape(1, bs)

    # static position + token-type-0 addend, tiled to (bs, d) once per call
    pos_type = jnp.tile(params["pos_emb"][:s] + params["type_emb"][0][None, :], (b, 1))

    inputs = [
        ids_r, ids_c, bidx_r, bidx_c,
        params["word_emb"], pos_type,
        params["emb_ln_g"].reshape(1, d), params["emb_ln_b"].reshape(1, d),
    ]
    for lp in params["layers"]:
        wqkv = jnp.concatenate([lp["wq"], lp["wk"], lp["wv"]], axis=1)          # (d, 3d)
        bqkv = jnp.concatenate([lp["bq"], lp["bk"], lp["bv"]]).reshape(1, 3 * d)
        inputs += [
            wqkv, bqkv,
            lp["wo"], lp["bo"].reshape(1, d),
            lp["ln1_g"].reshape(1, d), lp["ln1_b"].reshape(1, d),
            lp["w1"], lp["b1"].reshape(1, FFN),
            lp["w2"], lp["b2"].reshape(1, d),
            lp["ln2_g"].reshape(1, d), lp["ln2_b"].reshape(1, d),
        ]
    inputs += [params["pool_w"], params["pool_b"].reshape(1, d)]

    kernel = functools.partial(
        _encoder_kernel,
        num_layers=len(params["layers"]),
        batch=b,
        seq_len=s,
    )
    return pl.pallas_call(
        kernel,
        out_shape=jax.ShapeDtypeStruct((b, d), jnp.float32),
        in_specs=[VMEM_SPEC] * len(inputs),
        out_specs=VMEM_SPEC,
    )(*inputs)                                      # pooler_output: (len(labels), dim)


# ----------------------------------------------------------------------------
if __name__ == "__main__":
    key = jax.random.PRNGKey(0)
    params = init_params(key)

    labels = ["first entity", "second entity"]      # batch of 2 "labels"
    token_ids = synthetic_tokenize(labels)          # (2, 8) int32

    pooled = transformer_encoder_forward(params, token_ids)
    pooled = jax.block_until_ready(pooled)

    assert pooled.shape == (len(labels), HIDDEN)
    assert pooled.dtype == jnp.float32
    print("KERNEL_OK")
</pallas_src>

<mosaic_0001>
module attributes {stable_mosaic.version = 11 : i64} {
  func.func @_encoder_kernel(%arg0: memref<16x1xi32, #tpu.memory_space<vmem>>, %arg1: memref<1x16xi32, #tpu.memory_space<vmem>>, %arg2: memref<16x1xi32, #tpu.memory_space<vmem>>, %arg3: memref<1x16xi32, #tpu.memory_space<vmem>>, %arg4: memref<100x32xf32, #tpu.memory_space<vmem>>, %arg5: memref<16x32xf32, #tpu.memory_space<vmem>>, %arg6: memref<1x32xf32, #tpu.memory_space<vmem>>, %arg7: memref<1x32xf32, #tpu.memory_space<vmem>>, %arg8: memref<32x96xf32, #tpu.memory_space<vmem>>, %arg9: memref<1x96xf32, #tpu.memory_space<vmem>>, %arg10: memref<32x32xf32, #tpu.memory_space<vmem>>, %arg11: memref<1x32xf32, #tpu.memory_space<vmem>>, %arg12: memref<1x32xf32, #tpu.memory_space<vmem>>, %arg13: memref<1x32xf32, #tpu.memory_space<vmem>>, %arg14: memref<32x64xf32, #tpu.memory_space<vmem>>, %arg15: memref<1x64xf32, #tpu.memory_space<vmem>>, %arg16: memref<64x32xf32, #tpu.memory_space<vmem>>, %arg17: memref<1x32xf32, #tpu.memory_space<vmem>>, %arg18: memref<1x32xf32, #tpu.memory_space<vmem>>, %arg19: memref<1x32xf32, #tpu.memory_space<vmem>>, %arg20: memref<32x96xf32, #tpu.memory_space<vmem>>, %arg21: memref<1x96xf32, #tpu.memory_space<vmem>>, %arg22: memref<32x32xf32, #tpu.memory_space<vmem>>, %arg23: memref<1x32xf32, #tpu.memory_space<vmem>>, %arg24: memref<1x32xf32, #tpu.memory_space<vmem>>, %arg25: memref<1x32xf32, #tpu.memory_space<vmem>>, %arg26: memref<32x64xf32, #tpu.memory_space<vmem>>, %arg27: memref<1x64xf32, #tpu.memory_space<vmem>>, %arg28: memref<64x32xf32, #tpu.memory_space<vmem>>, %arg29: memref<1x32xf32, #tpu.memory_space<vmem>>, %arg30: memref<1x32xf32, #tpu.memory_space<vmem>>, %arg31: memref<1x32xf32, #tpu.memory_space<vmem>>, %arg32: memref<32x32xf32, #tpu.memory_space<vmem>>, %arg33: memref<1x32xf32, #tpu.memory_space<vmem>>, %arg34: memref<2x32xf32, #tpu.memory_space<vmem>>) attributes {dimension_semantics = [], scalar_prefetch = 0 : i64, scratch_operands = 0 : i64, tpu.core_type = #tpu.core_type<tc>} {
    %c0 = arith.constant 0 : index
    %c0_0 = arith.constant 0 : index
    %0 = vector.load %arg0[%c0, %c0_0] : memref<16x1xi32, #tpu.memory_space<vmem>>, vector<16x1xi32>
    %c0_1 = arith.constant 0 : index
    %c0_2 = arith.constant 0 : index
    %1 = vector.load %arg1[%c0_1, %c0_2] : memref<1x16xi32, #tpu.memory_space<vmem>>, vector<1x16xi32>
    %c0_3 = arith.constant 0 : index
    %c0_4 = arith.constant 0 : index
    %2 = vector.load %arg2[%c0_3, %c0_4] : memref<16x1xi32, #tpu.memory_space<vmem>>, vector<16x1xi32>
    %c0_5 = arith.constant 0 : index
    %c0_6 = arith.constant 0 : index
    %3 = vector.load %arg3[%c0_5, %c0_6] : memref<1x16xi32, #tpu.memory_space<vmem>>, vector<1x16xi32>
    %4 = tpu.iota {dimensions = array<i32: 1>} : vector<16x100xi32>
    %5 = vector.broadcast %0 : vector<16x1xi32> to vector<16x100xi32>
    %6 = arith.cmpi eq, %4, %5 : vector<16x100xi32>
    %7 = arith.extui %6 : vector<16x100xi1> to vector<16x100xi32>
    %8 = arith.sitofp %7 : vector<16x100xi32> to vector<16x100xf32>
    %c0_7 = arith.constant 0 : index
    %c0_8 = arith.constant 0 : index
    %9 = vector.load %arg4[%c0_7, %c0_8] : memref<100x32xf32, #tpu.memory_space<vmem>>, vector<100x32xf32>
    %cst = arith.constant dense<0.000000e+00> : vector<16x32xf32>
    %10 = tpu.matmul %8, %9, %cst {dimension_numbers = #tpu.dot_dimension_numbers<[1], [0], [0], [1], [0, 0, 1, 1], [], []>} : vector<16x100xf32>, vector<100x32xf32>, vector<16x32xf32> -> vector<16x32xf32>
    %c0_9 = arith.constant 0 : index
    %c0_10 = arith.constant 0 : index
    %11 = vector.load %arg5[%c0_9, %c0_10] : memref<16x32xf32, #tpu.memory_space<vmem>>, vector<16x32xf32>
    %12 = arith.addf %10, %11 : vector<16x32xf32>
    %c0_11 = arith.constant 0 : index
    %c0_12 = arith.constant 0 : index
    %13 = vector.load %arg6[%c0_11, %c0_12] : memref<1x32xf32, #tpu.memory_space<vmem>>, vector<1x32xf32>
    %c0_13 = arith.constant 0 : index
    %c0_14 = arith.constant 0 : index
    %14 = vector.load %arg7[%c0_13, %c0_14] : memref<1x32xf32, #tpu.memory_space<vmem>>, vector<1x32xf32>
    %cst_15 = arith.constant dense<0.000000e+00> : vector<16xf32>
    %15 = vector.multi_reduction <add>, %12, %cst_15 [1] : vector<16x32xf32> to vector<16xf32>
    %16 = vector.shape_cast %15 : vector<16xf32> to vector<16x1xf32>
    %cst_16 = arith.constant 3.200000e+01 : f32
    %17 = vector.broadcast %cst_16 : f32 to vector<16x1xf32>
    %18 = arith.divf %16, %17 : vector<16x1xf32>
    %19 = vector.broadcast %18 : vector<16x1xf32> to vector<16x32xf32>
    %20 = arith.subf %12, %19 : vector<16x32xf32>
    %21 = arith.mulf %20, %20 : vector<16x32xf32>
    %cst_17 = arith.constant dense<0.000000e+00> : vector<16xf32>
    %22 = vector.multi_reduction <add>, %21, %cst_17 [1] : vector<16x32xf32> to vector<16xf32>
    %23 = vector.shape_cast %22 : vector<16xf32> to vector<16x1xf32>
    %cst_18 = arith.constant 3.200000e+01 : f32
    %24 = vector.broadcast %cst_18 : f32 to vector<16x1xf32>
    %25 = arith.divf %23, %24 : vector<16x1xf32>
    %cst_19 = arith.constant 9.99999996E-13 : f32
    %26 = vector.broadcast %cst_19 : f32 to vector<16x1xf32>
    %27 = arith.addf %25, %26 : vector<16x1xf32>
    %28 = math.rsqrt %27 : vector<16x1xf32>
    %29 = vector.broadcast %28 : vector<16x1xf32> to vector<16x32xf32>
    %30 = arith.mulf %20, %29 : vector<16x32xf32>
    %31 = vector.broadcast %13 : vector<1x32xf32> to vector<16x32xf32>
    %32 = arith.mulf %30, %31 : vector<16x32xf32>
    %33 = vector.broadcast %14 : vector<1x32xf32> to vector<16x32xf32>
    %34 = arith.addf %32, %33 : vector<16x32xf32>
    %c0_i32 = arith.constant 0 : i32
    %35 = vector.broadcast %c0_i32 : i32 to vector<1x16xi32>
    %36 = arith.cmpi ne, %1, %35 : vector<1x16xi32>
    %37 = vector.broadcast %2 : vector<16x1xi32> to vector<16x16xi32>
    %38 = vector.broadcast %3 : vector<1x16xi32> to vector<16x16xi32>
    %39 = arith.cmpi eq, %37, %38 : vector<16x16xi32>
    %40 = vector.broadcast %36 : vector<1x16xi1> to vector<16x16xi1>
    %41 = arith.andi %39, %40 : vector<16x16xi1>
    %cst_20 = arith.constant 0.000000e+00 : f32
    %cst_21 = arith.constant -1.000000e+30 : f32
    %42 = vector.broadcast %cst_20 : f32 to vector<16x16xf32>
    %43 = vector.broadcast %cst_21 : f32 to vector<16x16xf32>
    %44 = arith.select %41, %42, %43 : vector<16x16xi1>, vector<16x16xf32>
    %c0_22 = arith.constant 0 : index
    %c0_23 = arith.constant 0 : index
    %45 = vector.load %arg8[%c0_22, %c0_23] : memref<32x96xf32, #tpu.memory_space<vmem>>, vector<32x96xf32>
    %c0_24 = arith.constant 0 : index
    %c0_25 = arith.constant 0 : index
    %46 = vector.load %arg9[%c0_24, %c0_25] : memref<1x96xf32, #tpu.memory_space<vmem>>, vector<1x96xf32>
    %c0_26 = arith.constant 0 : index
    %c0_27 = arith.constant 0 : index
    %47 = vector.load %arg10[%c0_26, %c0_27] : memref<32x32xf32, #tpu.memory_space<vmem>>, vector<32x32xf32>
    %c0_28 = arith.constant 0 : index
    %c0_29 = arith.constant 0 : index
    %48 = vector.load %arg11[%c0_28, %c0_29] : memref<1x32xf32, #tpu.memory_space<vmem>>, vector<1x32xf32>
    %c0_30 = arith.constant 0 : index
    %c0_31 = arith.constant 0 : index
    %49 = vector.load %arg12[%c0_30, %c0_31] : memref<1x32xf32, #tpu.memory_space<vmem>>, vector<1x32xf32>
    %c0_32 = arith.constant 0 : index
    %c0_33 = arith.constant 0 : index
    %50 = vector.load %arg13[%c0_32, %c0_33] : memref<1x32xf32, #tpu.memory_space<vmem>>, vector<1x32xf32>
    %c0_34 = arith.constant 0 : index
    %c0_35 = arith.constant 0 : index
    %51 = vector.load %arg14[%c0_34, %c0_35] : memref<32x64xf32, #tpu.memory_space<vmem>>, vector<32x64xf32>
    %c0_36 = arith.constant 0 : index
    %c0_37 = arith.constant 0 : index
    %52 = vector.load %arg15[%c0_36, %c0_37] : memref<1x64xf32, #tpu.memory_space<vmem>>, vector<1x64xf32>
    %c0_38 = arith.constant 0 : index
    %c0_39 = arith.constant 0 : index
    %53 = vector.load %arg16[%c0_38, %c0_39] : memref<64x32xf32, #tpu.memory_space<vmem>>, vector<64x32xf32>
    %c0_40 = arith.constant 0 : index
    %c0_41 = arith.constant 0 : index
    %54 = vector.load %arg17[%c0_40, %c0_41] : memref<1x32xf32, #tpu.memory_space<vmem>>, vector<1x32xf32>
    %c0_42 = arith.constant 0 : index
    %c0_43 = arith.constant 0 : index
    %55 = vector.load %arg18[%c0_42, %c0_43] : memref<1x32xf32, #tpu.memory_space<vmem>>, vector<1x32xf32>
    %c0_44 = arith.constant 0 : index
    %c0_45 = arith.constant 0 : index
    %56 = vector.load %arg19[%c0_44, %c0_45] : memref<1x32xf32, #tpu.memory_space<vmem>>, vector<1x32xf32>
    %cst_46 = arith.constant dense<0.000000e+00> : vector<16x96xf32>
    %57 = tpu.matmul %34, %45, %cst_46 {dimension_numbers = #tpu.dot_dimension_numbers<[1], [0], [0], [1], [0, 0, 1, 1], [], []>} : vector<16x32xf32>, vector<32x96xf32>, vector<16x96xf32> -> vector<16x96xf32>
    %58 = vector.broadcast %46 : vector<1x96xf32> to vector<16x96xf32>
    %59 = arith.addf %57, %58 : vector<16x96xf32>
    %60 = vector.extract_strided_slice %59 {offsets = [0, 0], sizes = [16, 32], strides = [1, 1]} : vector<16x96xf32> to vector<16x32xf32>
    %cst_47 = arith.constant 0.353553385 : f32
    %61 = vector.broadcast %cst_47 : f32 to vector<16x32xf32>
    %62 = arith.mulf %60, %61 : vector<16x32xf32>
    %63 = vector.extract_strided_slice %59 {offsets = [0, 32], sizes = [16, 32], strides = [1, 1]} : vector<16x96xf32> to vector<16x32xf32>
    %64 = vector.extract_strided_slice %59 {offsets = [0, 64], sizes = [16, 32], strides = [1, 1]} : vector<16x96xf32> to vector<16x32xf32>
    %65 = vector.extract_strided_slice %62 {offsets = [0, 0], sizes = [16, 8], strides = [1, 1]} : vector<16x32xf32> to vector<16x8xf32>
    %66 = vector.extract_strided_slice %63 {offsets = [0, 0], sizes = [16, 8], strides = [1, 1]} : vector<16x32xf32> to vector<16x8xf32>
    %67 = vector.extract_strided_slice %64 {offsets = [0, 0], sizes = [16, 8], strides = [1, 1]} : vector<16x32xf32> to vector<16x8xf32>
    %cst_48 = arith.constant dense<0.000000e+00> : vector<16x16xf32>
    %68 = tpu.matmul %65, %66, %cst_48 {dimension_numbers = #tpu.dot_dimension_numbers<[1], [1], [0], [0], [0, 0, 1, 0], [], []>} : vector<16x8xf32>, vector<16x8xf32>, vector<16x16xf32> -> vector<16x16xf32>
    %69 = arith.addf %68, %44 : vector<16x16xf32>
    %cst_49 = arith.constant dense<0xFF800000> : vector<16xf32>
    %70 = vector.multi_reduction <maximumf>, %69, %cst_49 [1] : vector<16x16xf32> to vector<16xf32>
    %71 = vector.shape_cast %70 : vector<16xf32> to vector<16x1xf32>
    %72 = vector.broadcast %71 : vector<16x1xf32> to vector<16x16xf32>
    %73 = arith.subf %69, %72 : vector<16x16xf32>
    %74 = math.exp %73 : vector<16x16xf32>
    %cst_50 = arith.constant dense<0.000000e+00> : vector<16xf32>
    %75 = vector.multi_reduction <add>, %74, %cst_50 [1] : vector<16x16xf32> to vector<16xf32>
    %76 = vector.shape_cast %75 : vector<16xf32> to vector<16x1xf32>
    %77 = tpu.reciprocal %76 {approx = true} : vector<16x1xf32> -> vector<16x1xf32>
    %78 = vector.broadcast %77 : vector<16x1xf32> to vector<16x16xf32>
    %79 = arith.mulf %74, %78 : vector<16x16xf32>
    %cst_51 = arith.constant dense<0.000000e+00> : vector<16x8xf32>
    %80 = tpu.matmul %79, %67, %cst_51 {dimension_numbers = #tpu.dot_dimension_numbers<[1], [0], [0], [1], [0, 0, 1, 1], [], []>} : vector<16x16xf32>, vector<16x8xf32>, vector<16x8xf32> -> vector<16x8xf32>
    %81 = vector.extract_strided_slice %62 {offsets = [0, 8], sizes = [16, 8], strides = [1, 1]} : vector<16x32xf32> to vector<16x8xf32>
    %82 = vector.extract_strided_slice %63 {offsets = [0, 8], sizes = [16, 8], strides = [1, 1]} : vector<16x32xf32> to vector<16x8xf32>
    %83 = vector.extract_strided_slice %64 {offsets = [0, 8], sizes = [16, 8], strides = [1, 1]} : vector<16x32xf32> to vector<16x8xf32>
    %cst_52 = arith.constant dense<0.000000e+00> : vector<16x16xf32>
    %84 = tpu.matmul %81, %82, %cst_52 {dimension_numbers = #tpu.dot_dimension_numbers<[1], [1], [0], [0], [0, 0, 1, 0], [], []>} : vector<16x8xf32>, vector<16x8xf32>, vector<16x16xf32> -> vector<16x16xf32>
    %85 = arith.addf %84, %44 : vector<16x16xf32>
    %cst_53 = arith.constant dense<0xFF800000> : vector<16xf32>
    %86 = vector.multi_reduction <maximumf>, %85, %cst_53 [1] : vector<16x16xf32> to vector<16xf32>
    %87 = vector.shape_cast %86 : vector<16xf32> to vector<16x1xf32>
    %88 = vector.broadcast %87 : vector<16x1xf32> to vector<16x16xf32>
    %89 = arith.subf %85, %88 : vector<16x16xf32>
    %90 = math.exp %89 : vector<16x16xf32>
    %cst_54 = arith.constant dense<0.000000e+00> : vector<16xf32>
    %91 = vector.multi_reduction <add>, %90, %cst_54 [1] : vector<16x16xf32> to vector<16xf32>
    %92 = vector.shape_cast %91 : vector<16xf32> to vector<16x1xf32>
    %93 = tpu.reciprocal %92 {approx = true} : vector<16x1xf32> -> vector<16x1xf32>
    %94 = vector.broadcast %93 : vector<16x1xf32> to vector<16x16xf32>
    %95 = arith.mulf %90, %94 : vector<16x16xf32>
    %cst_55 = arith.constant dense<0.000000e+00> : vector<16x8xf32>
    %96 = tpu.matmul %95, %83, %cst_55 {dimension_numbers = #tpu.dot_dimension_numbers<[1], [0], [0], [1], [0, 0, 1, 1], [], []>} : vector<16x16xf32>, vector<16x8xf32>, vector<16x8xf32> -> vector<16x8xf32>
    %97 = vector.extract_strided_slice %62 {offsets = [0, 16], sizes = [16, 8], strides = [1, 1]} : vector<16x32xf32> to vector<16x8xf32>
    %98 = vector.extract_strided_slice %63 {offsets = [0, 16], sizes = [16, 8], strides = [1, 1]} : vector<16x32xf32> to vector<16x8xf32>
    %99 = vector.extract_strided_slice %64 {offsets = [0, 16], sizes = [16, 8], strides = [1, 1]} : vector<16x32xf32> to vector<16x8xf32>
    %cst_56 = arith.constant dense<0.000000e+00> : vector<16x16xf32>
    %100 = tpu.matmul %97, %98, %cst_56 {dimension_numbers = #tpu.dot_dimension_numbers<[1], [1], [0], [0], [0, 0, 1, 0], [], []>} : vector<16x8xf32>, vector<16x8xf32>, vector<16x16xf32> -> vector<16x16xf32>
    %101 = arith.addf %100, %44 : vector<16x16xf32>
    %cst_57 = arith.constant dense<0xFF800000> : vector<16xf32>
    %102 = vector.multi_reduction <maximumf>, %101, %cst_57 [1] : vector<16x16xf32> to vector<16xf32>
    %103 = vector.shape_cast %102 : vector<16xf32> to vector<16x1xf32>
    %104 = vector.broadcast %103 : vector<16x1xf32> to vector<16x16xf32>
    %105 = arith.subf %101, %104 : vector<16x16xf32>
    %106 = math.exp %105 : vector<16x16xf32>
    %cst_58 = arith.constant dense<0.000000e+00> : vector<16xf32>
    %107 = vector.multi_reduction <add>, %106, %cst_58 [1] : vector<16x16xf32> to vector<16xf32>
    %108 = vector.shape_cast %107 : vector<16xf32> to vector<16x1xf32>
    %109 = tpu.reciprocal %108 {approx = true} : vector<16x1xf32> -> vector<16x1xf32>
    %110 = vector.broadcast %109 : vector<16x1xf32> to vector<16x16xf32>
    %111 = arith.mulf %106, %110 : vector<16x16xf32>
    %cst_59 = arith.constant dense<0.000000e+00> : vector<16x8xf32>
    %112 = tpu.matmul %111, %99, %cst_59 {dimension_numbers = #tpu.dot_dimension_numbers<[1], [0], [0], [1], [0, 0, 1, 1], [], []>} : vector<16x16xf32>, vector<16x8xf32>, vector<16x8xf32> -> vector<16x8xf32>
    %113 = vector.extract_strided_slice %62 {offsets = [0, 24], sizes = [16, 8], strides = [1, 1]} : vector<16x32xf32> to vector<16x8xf32>
    %114 = vector.extract_strided_slice %63 {offsets = [0, 24], sizes = [16, 8], strides = [1, 1]} : vector<16x32xf32> to vector<16x8xf32>
    %115 = vector.extract_strided_slice %64 {offsets = [0, 24], sizes = [16, 8], strides = [1, 1]} : vector<16x32xf32> to vector<16x8xf32>
    %cst_60 = arith.constant dense<0.000000e+00> : vector<16x16xf32>
    %116 = tpu.matmul %113, %114, %cst_60 {dimension_numbers = #tpu.dot_dimension_numbers<[1], [1], [0], [0], [0, 0, 1, 0], [], []>} : vector<16x8xf32>, vector<16x8xf32>, vector<16x16xf32> -> vector<16x16xf32>
    %117 = arith.addf %116, %44 : vector<16x16xf32>
    %cst_61 = arith.constant dense<0xFF800000> : vector<16xf32>
    %118 = vector.multi_reduction <maximumf>, %117, %cst_61 [1] : vector<16x16xf32> to vector<16xf32>
    %119 = vector.shape_cast %118 : vector<16xf32> to vector<16x1xf32>
    %120 = vector.broadcast %119 : vector<16x1xf32> to vector<16x16xf32>
    %121 = arith.subf %117, %120 : vector<16x16xf32>
    %122 = math.exp %121 : vector<16x16xf32>
    %cst_62 = arith.constant dense<0.000000e+00> : vector<16xf32>
    %123 = vector.multi_reduction <add>, %122, %cst_62 [1] : vector<16x16xf32> to vector<16xf32>
    %124 = vector.shape_cast %123 : vector<16xf32> to vector<16x1xf32>
    %125 = tpu.reciprocal %124 {approx = true} : vector<16x1xf32> -> vector<16x1xf32>
    %126 = vector.broadcast %125 : vector<16x1xf32> to vector<16x16xf32>
    %127 = arith.mulf %122, %126 : vector<16x16xf32>
    %cst_63 = arith.constant dense<0.000000e+00> : vector<16x8xf32>
    %128 = tpu.matmul %127, %115, %cst_63 {dimension_numbers = #tpu.dot_dimension_numbers<[1], [0], [0], [1], [0, 0, 1, 1], [], []>} : vector<16x16xf32>, vector<16x8xf32>, vector<16x8xf32> -> vector<16x8xf32>
    %129 = tpu.concatenate %80, %96, %112, %128 in 1 : vector<16x8xf32>, vector<16x8xf32>, vector<16x8xf32>, vector<16x8xf32> -> vector<16x32xf32>
    %cst_64 = arith.constant dense<0.000000e+00> : vector<16x32xf32>
    %130 = tpu.matmul %129, %47, %cst_64 {dimension_numbers = #tpu.dot_dimension_numbers<[1], [0], [0], [1], [0, 0, 1, 1], [], []>} : vector<16x32xf32>, vector<32x32xf32>, vector<16x32xf32> -> vector<16x32xf32>
    %131 = vector.broadcast %48 : vector<1x32xf32> to vector<16x32xf32>
    %132 = arith.addf %130, %131 : vector<16x32xf32>
    %133 = arith.addf %34, %132 : vector<16x32xf32>
    %cst_65 = arith.constant dense<0.000000e+00> : vector<16xf32>
    %134 = vector.multi_reduction <add>, %133, %cst_65 [1] : vector<16x32xf32> to vector<16xf32>
    %135 = vector.shape_cast %134 : vector<16xf32> to vector<16x1xf32>
    %cst_66 = arith.constant 3.200000e+01 : f32
    %136 = vector.broadcast %cst_66 : f32 to vector<16x1xf32>
    %137 = arith.divf %135, %136 : vector<16x1xf32>
    %138 = vector.broadcast %137 : vector<16x1xf32> to vector<16x32xf32>
    %139 = arith.subf %133, %138 : vector<16x32xf32>
    %140 = arith.mulf %139, %139 : vector<16x32xf32>
    %cst_67 = arith.constant dense<0.000000e+00> : vector<16xf32>
    %141 = vector.multi_reduction <add>, %140, %cst_67 [1] : vector<16x32xf32> to vector<16xf32>
    %142 = vector.shape_cast %141 : vector<16xf32> to vector<16x1xf32>
    %cst_68 = arith.constant 3.200000e+01 : f32
    %143 = vector.broadcast %cst_68 : f32 to vector<16x1xf32>
    %144 = arith.divf %142, %143 : vector<16x1xf32>
    %cst_69 = arith.constant 9.99999996E-13 : f32
    %145 = vector.broadcast %cst_69 : f32 to vector<16x1xf32>
    %146 = arith.addf %144, %145 : vector<16x1xf32>
    %147 = math.rsqrt %146 : vector<16x1xf32>
    %148 = vector.broadcast %147 : vector<16x1xf32> to vector<16x32xf32>
    %149 = arith.mulf %139, %148 : vector<16x32xf32>
    %150 = vector.broadcast %49 : vector<1x32xf32> to vector<16x32xf32>
    %151 = arith.mulf %149, %150 : vector<16x32xf32>
    %152 = vector.broadcast %50 : vector<1x32xf32> to vector<16x32xf32>
    %153 = arith.addf %151, %152 : vector<16x32xf32>
    %cst_70 = arith.constant dense<0.000000e+00> : vector<16x64xf32>
    %154 = tpu.matmul %153, %51, %cst_70 {dimension_numbers = #tpu.dot_dimension_numbers<[1], [0], [0], [1], [0, 0, 1, 1], [], []>} : vector<16x32xf32>, vector<32x64xf32>, vector<16x64xf32> -> vector<16x64xf32>
    %155 = vector.broadcast %52 : vector<1x64xf32> to vector<16x64xf32>
    %156 = arith.addf %154, %155 : vector<16x64xf32>
    %cst_71 = arith.constant 5.000000e-01 : f32
    %157 = vector.broadcast %cst_71 : f32 to vector<16x64xf32>
    %158 = arith.mulf %157, %156 : vector<16x64xf32>
    %cst_72 = arith.constant 0.707106769 : f32
    %159 = vector.broadcast %cst_72 : f32 to vector<16x64xf32>
    %160 = arith.mulf %156, %159 : vector<16x64xf32>
    %161 = math.erf %160 : vector<16x64xf32>
    %cst_73 = arith.constant 1.000000e+00 : f32
    %162 = vector.broadcast %cst_73 : f32 to vector<16x64xf32>
    %163 = arith.addf %162, %161 : vector<16x64xf32>
    %164 = arith.mulf %158, %163 : vector<16x64xf32>
    %cst_74 = arith.constant dense<0.000000e+00> : vector<16x32xf32>
    %165 = tpu.matmul %164, %53, %cst_74 {dimension_numbers = #tpu.dot_dimension_numbers<[1], [0], [0], [1], [0, 0, 1, 1], [], []>} : vector<16x64xf32>, vector<64x32xf32>, vector<16x32xf32> -> vector<16x32xf32>
    %166 = vector.broadcast %54 : vector<1x32xf32> to vector<16x32xf32>
    %167 = arith.addf %165, %166 : vector<16x32xf32>
    %168 = arith.addf %153, %167 : vector<16x32xf32>
    %cst_75 = arith.constant dense<0.000000e+00> : vector<16xf32>
    %169 = vector.multi_reduction <add>, %168, %cst_75 [1] : vector<16x32xf32> to vector<16xf32>
    %170 = vector.shape_cast %169 : vector<16xf32> to vector<16x1xf32>
    %cst_76 = arith.constant 3.200000e+01 : f32
    %171 = vector.broadcast %cst_76 : f32 to vector<16x1xf32>
    %172 = arith.divf %170, %171 : vector<16x1xf32>
    %173 = vector.broadcast %172 : vector<16x1xf32> to vector<16x32xf32>
    %174 = arith.subf %168, %173 : vector<16x32xf32>
    %175 = arith.mulf %174, %174 : vector<16x32xf32>
    %cst_77 = arith.constant dense<0.000000e+00> : vector<16xf32>
    %176 = vector.multi_reduction <add>, %175, %cst_77 [1] : vector<16x32xf32> to vector<16xf32>
    %177 = vector.shape_cast %176 : vector<16xf32> to vector<16x1xf32>
    %cst_78 = arith.constant 3.200000e+01 : f32
    %178 = vector.broadcast %cst_78 : f32 to vector<16x1xf32>
    %179 = arith.divf %177, %178 : vector<16x1xf32>
    %cst_79 = arith.constant 9.99999996E-13 : f32
    %180 = vector.broadcast %cst_79 : f32 to vector<16x1xf32>
    %181 = arith.addf %179, %180 : vector<16x1xf32>
    %182 = math.rsqrt %181 : vector<16x1xf32>
    %183 = vector.broadcast %182 : vector<16x1xf32> to vector<16x32xf32>
    %184 = arith.mulf %174, %183 : vector<16x32xf32>
    %185 = vector.broadcast %55 : vector<1x32xf32> to vector<16x32xf32>
    %186 = arith.mulf %184, %185 : vector<16x32xf32>
    %187 = vector.broadcast %56 : vector<1x32xf32> to vector<16x32xf32>
    %188 = arith.addf %186, %187 : vector<16x32xf32>
    %c0_80 = arith.constant 0 : index
    %c0_81 = arith.constant 0 : index
    %189 = vector.load %arg20[%c0_80, %c0_81] : memref<32x96xf32, #tpu.memory_space<vmem>>, vector<32x96xf32>
    %c0_82 = arith.constant 0 : index
    %c0_83 = arith.constant 0 : index
    %190 = vector.load %arg21[%c0_82, %c0_83] : memref<1x96xf32, #tpu.memory_space<vmem>>, vector<1x96xf32>
    %c0_84 = arith.constant 0 : index
    %c0_85 = arith.constant 0 : index
    %191 = vector.load %arg22[%c0_84, %c0_85] : memref<32x32xf32, #tpu.memory_space<vmem>>, vector<32x32xf32>
    %c0_86 = arith.constant 0 : index
    %c0_87 = arith.constant 0 : index
    %192 = vector.load %arg23[%c0_86, %c0_87] : memref<1x32xf32, #tpu.memory_space<vmem>>, vector<1x32xf32>
    %c0_88 = arith.constant 0 : index
    %c0_89 = arith.constant 0 : index
    %193 = vector.load %arg24[%c0_88, %c0_89] : memref<1x32xf32, #tpu.memory_space<vmem>>, vector<1x32xf32>
    %c0_90 = arith.constant 0 : index
    %c0_91 = arith.constant 0 : index
    %194 = vector.load %arg25[%c0_90, %c0_91] : memref<1x32xf32, #tpu.memory_space<vmem>>, vector<1x32xf32>
    %c0_92 = arith.constant 0 : index
    %c0_93 = arith.constant 0 : index
    %195 = vector.load %arg26[%c0_92, %c0_93] : memref<32x64xf32, #tpu.memory_space<vmem>>, vector<32x64xf32>
    %c0_94 = arith.constant 0 : index
    %c0_95 = arith.constant 0 : index
    %196 = vector.load %arg27[%c0_94, %c0_95] : memref<1x64xf32, #tpu.memory_space<vmem>>, vector<1x64xf32>
    %c0_96 = arith.constant 0 : index
    %c0_97 = arith.constant 0 : index
    %197 = vector.load %arg28[%c0_96, %c0_97] : memref<64x32xf32, #tpu.memory_space<vmem>>, vector<64x32xf32>
    %c0_98 = arith.constant 0 : index
    %c0_99 = arith.constant 0 : index
    %198 = vector.load %arg29[%c0_98, %c0_99] : memref<1x32xf32, #tpu.memory_space<vmem>>, vector<1x32xf32>
    %c0_100 = arith.constant 0 : index
    %c0_101 = arith.constant 0 : index
    %199 = vector.load %arg30[%c0_100, %c0_101] : memref<1x32xf32, #tpu.memory_space<vmem>>, vector<1x32xf32>
    %c0_102 = arith.constant 0 : index
    %c0_103 = arith.constant 0 : index
    %200 = vector.load %arg31[%c0_102, %c0_103] : memref<1x32xf32, #tpu.memory_space<vmem>>, vector<1x32xf32>
    %cst_104 = arith.constant dense<0.000000e+00> : vector<16x96xf32>
    %201 = tpu.matmul %188, %189, %cst_104 {dimension_numbers = #tpu.dot_dimension_numbers<[1], [0], [0], [1], [0, 0, 1, 1], [], []>} : vector<16x32xf32>, vector<32x96xf32>, vector<16x96xf32> -> vector<16x96xf32>
    %202 = vector.broadcast %190 : vector<1x96xf32> to vector<16x96xf32>
    %203 = arith.addf %201, %202 : vector<16x96xf32>
    %204 = vector.extract_strided_slice %203 {offsets = [0, 0], sizes = [16, 32], strides = [1, 1]} : vector<16x96xf32> to vector<16x32xf32>
    %cst_105 = arith.constant 0.353553385 : f32
    %205 = vector.broadcast %cst_105 : f32 to vector<16x32xf32>
    %206 = arith.mulf %204, %205 : vector<16x32xf32>
    %207 = vector.extract_strided_slice %203 {offsets = [0, 32], sizes = [16, 32], strides = [1, 1]} : vector<16x96xf32> to vector<16x32xf32>
    %208 = vector.extract_strided_slice %203 {offsets = [0, 64], sizes = [16, 32], strides = [1, 1]} : vector<16x96xf32> to vector<16x32xf32>
    %209 = vector.extract_strided_slice %206 {offsets = [0, 0], sizes = [16, 8], strides = [1, 1]} : vector<16x32xf32> to vector<16x8xf32>
    %210 = vector.extract_strided_slice %207 {offsets = [0, 0], sizes = [16, 8], strides = [1, 1]} : vector<16x32xf32> to vector<16x8xf32>
    %211 = vector.extract_strided_slice %208 {offsets = [0, 0], sizes = [16, 8], strides = [1, 1]} : vector<16x32xf32> to vector<16x8xf32>
    %cst_106 = arith.constant dense<0.000000e+00> : vector<16x16xf32>
    %212 = tpu.matmul %209, %210, %cst_106 {dimension_numbers = #tpu.dot_dimension_numbers<[1], [1], [0], [0], [0, 0, 1, 0], [], []>} : vector<16x8xf32>, vector<16x8xf32>, vector<16x16xf32> -> vector<16x16xf32>
    %213 = arith.addf %212, %44 : vector<16x16xf32>
    %cst_107 = arith.constant dense<0xFF800000> : vector<16xf32>
    %214 = vector.multi_reduction <maximumf>, %213, %cst_107 [1] : vector<16x16xf32> to vector<16xf32>
    %215 = vector.shape_cast %214 : vector<16xf32> to vector<16x1xf32>
    %216 = vector.broadcast %215 : vector<16x1xf32> to vector<16x16xf32>
    %217 = arith.subf %213, %216 : vector<16x16xf32>
    %218 = math.exp %217 : vector<16x16xf32>
    %cst_108 = arith.constant dense<0.000000e+00> : vector<16xf32>
    %219 = vector.multi_reduction <add>, %218, %cst_108 [1] : vector<16x16xf32> to vector<16xf32>
    %220 = vector.shape_cast %219 : vector<16xf32> to vector<16x1xf32>
    %221 = tpu.reciprocal %220 {approx = true} : vector<16x1xf32> -> vector<16x1xf32>
    %222 = vector.broadcast %221 : vector<16x1xf32> to vector<16x16xf32>
    %223 = arith.mulf %218, %222 : vector<16x16xf32>
    %cst_109 = arith.constant dense<0.000000e+00> : vector<16x8xf32>
    %224 = tpu.matmul %223, %211, %cst_109 {dimension_numbers = #tpu.dot_dimension_numbers<[1], [0], [0], [1], [0, 0, 1, 1], [], []>} : vector<16x16xf32>, vector<16x8xf32>, vector<16x8xf32> -> vector<16x8xf32>
    %225 = vector.extract_strided_slice %206 {offsets = [0, 8], sizes = [16, 8], strides = [1, 1]} : vector<16x32xf32> to vector<16x8xf32>
    %226 = vector.extract_strided_slice %207 {offsets = [0, 8], sizes = [16, 8], strides = [1, 1]} : vector<16x32xf32> to vector<16x8xf32>
    %227 = vector.extract_strided_slice %208 {offsets = [0, 8], sizes = [16, 8], strides = [1, 1]} : vector<16x32xf32> to vector<16x8xf32>
    %cst_110 = arith.constant dense<0.000000e+00> : vector<16x16xf32>
    %228 = tpu.matmul %225, %226, %cst_110 {dimension_numbers = #tpu.dot_dimension_numbers<[1], [1], [0], [0], [0, 0, 1, 0], [], []>} : vector<16x8xf32>, vector<16x8xf32>, vector<16x16xf32> -> vector<16x16xf32>
    %229 = arith.addf %228, %44 : vector<16x16xf32>
    %cst_111 = arith.constant dense<0xFF800000> : vector<16xf32>
    %230 = vector.multi_reduction <maximumf>, %229, %cst_111 [1] : vector<16x16xf32> to vector<16xf32>
    %231 = vector.shape_cast %230 : vector<16xf32> to vector<16x1xf32>
    %232 = vector.broadcast %231 : vector<16x1xf32> to vector<16x16xf32>
    %233 = arith.subf %229, %232 : vector<16x16xf32>
    %234 = math.exp %233 : vector<16x16xf32>
    %cst_112 = arith.constant dense<0.000000e+00> : vector<16xf32>
    %235 = vector.multi_reduction <add>, %234, %cst_112 [1] : vector<16x16xf32> to vector<16xf32>
    %236 = vector.shape_cast %235 : vector<16xf32> to vector<16x1xf32>
    %237 = tpu.reciprocal %236 {approx = true} : vector<16x1xf32> -> vector<16x1xf32>
    %238 = vector.broadcast %237 : vector<16x1xf32> to vector<16x16xf32>
    %239 = arith.mulf %234, %238 : vector<16x16xf32>
    %cst_113 = arith.constant dense<0.000000e+00> : vector<16x8xf32>
    %240 = tpu.matmul %239, %227, %cst_113 {dimension_numbers = #tpu.dot_dimension_numbers<[1], [0], [0], [1], [0, 0, 1, 1], [], []>} : vector<16x16xf32>, vector<16x8xf32>, vector<16x8xf32> -> vector<16x8xf32>
    %241 = vector.extract_strided_slice %206 {offsets = [0, 16], sizes = [16, 8], strides = [1, 1]} : vector<16x32xf32> to vector<16x8xf32>
    %242 = vector.extract_strided_slice %207 {offsets = [0, 16], sizes = [16, 8], strides = [1, 1]} : vector<16x32xf32> to vector<16x8xf32>
    %243 = vector.extract_strided_slice %208 {offsets = [0, 16], sizes = [16, 8], strides = [1, 1]} : vector<16x32xf32> to vector<16x8xf32>
    %cst_114 = arith.constant dense<0.000000e+00> : vector<16x16xf32>
    %244 = tpu.matmul %241, %242, %cst_114 {dimension_numbers = #tpu.dot_dimension_numbers<[1], [1], [0], [0], [0, 0, 1, 0], [], []>} : vector<16x8xf32>, vector<16x8xf32>, vector<16x16xf32> -> vector<16x16xf32>
    %245 = arith.addf %244, %44 : vector<16x16xf32>
    %cst_115 = arith.constant dense<0xFF800000> : vector<16xf32>
    %246 = vector.multi_reduction <maximumf>, %245, %cst_115 [1] : vector<16x16xf32> to vector<16xf32>
    %247 = vector.shape_cast %246 : vector<16xf32> to vector<16x1xf32>
    %248 = vector.broadcast %247 : vector<16x1xf32> to vector<16x16xf32>
    %249 = arith.subf %245, %248 : vector<16x16xf32>
    %250 = math.exp %249 : vector<16x16xf32>
    %cst_116 = arith.constant dense<0.000000e+00> : vector<16xf32>
    %251 = vector.multi_reduction <add>, %250, %cst_116 [1] : vector<16x16xf32> to vector<16xf32>
    %252 = vector.shape_cast %251 : vector<16xf32> to vector<16x1xf32>
    %253 = tpu.reciprocal %252 {approx = true} : vector<16x1xf32> -> vector<16x1xf32>
    %254 = vector.broadcast %253 : vector<16x1xf32> to vector<16x16xf32>
    %255 = arith.mulf %250, %254 : vector<16x16xf32>
    %cst_117 = arith.constant dense<0.000000e+00> : vector<16x8xf32>
    %256 = tpu.matmul %255, %243, %cst_117 {dimension_numbers = #tpu.dot_dimension_numbers<[1], [0], [0], [1], [0, 0, 1, 1], [], []>} : vector<16x16xf32>, vector<16x8xf32>, vector<16x8xf32> -> vector<16x8xf32>
    %257 = vector.extract_strided_slice %206 {offsets = [0, 24], sizes = [16, 8], strides = [1, 1]} : vector<16x32xf32> to vector<16x8xf32>
    %258 = vector.extract_strided_slice %207 {offsets = [0, 24], sizes = [16, 8], strides = [1, 1]} : vector<16x32xf32> to vector<16x8xf32>
    %259 = vector.extract_strided_slice %208 {offsets = [0, 24], sizes = [16, 8], strides = [1, 1]} : vector<16x32xf32> to vector<16x8xf32>
    %cst_118 = arith.constant dense<0.000000e+00> : vector<16x16xf32>
    %260 = tpu.matmul %257, %258, %cst_118 {dimension_numbers = #tpu.dot_dimension_numbers<[1], [1], [0], [0], [0, 0, 1, 0], [], []>} : vector<16x8xf32>, vector<16x8xf32>, vector<16x16xf32> -> vector<16x16xf32>
    %261 = arith.addf %260, %44 : vector<16x16xf32>
    %cst_119 = arith.constant dense<0xFF800000> : vector<16xf32>
    %262 = vector.multi_reduction <maximumf>, %261, %cst_119 [1] : vector<16x16xf32> to vector<16xf32>
    %263 = vector.shape_cast %262 : vector<16xf32> to vector<16x1xf32>
    %264 = vector.broadcast %263 : vector<16x1xf32> to vector<16x16xf32>
    %265 = arith.subf %261, %264 : vector<16x16xf32>
    %266 = math.exp %265 : vector<16x16xf32>
    %cst_120 = arith.constant dense<0.000000e+00> : vector<16xf32>
    %267 = vector.multi_reduction <add>, %266, %cst_120 [1] : vector<16x16xf32> to vector<16xf32>
    %268 = vector.shape_cast %267 : vector<16xf32> to vector<16x1xf32>
    %269 = tpu.reciprocal %268 {approx = true} : vector<16x1xf32> -> vector<16x1xf32>
    %270 = vector.broadcast %269 : vector<16x1xf32> to vector<16x16xf32>
    %271 = arith.mulf %266, %270 : vector<16x16xf32>
    %cst_121 = arith.constant dense<0.000000e+00> : vector<16x8xf32>
    %272 = tpu.matmul %271, %259, %cst_121 {dimension_numbers = #tpu.dot_dimension_numbers<[1], [0], [0], [1], [0, 0, 1, 1], [], []>} : vector<16x16xf32>, vector<16x8xf32>, vector<16x8xf32> -> vector<16x8xf32>
    %273 = tpu.concatenate %224, %240, %256, %272 in 1 : vector<16x8xf32>, vector<16x8xf32>, vector<16x8xf32>, vector<16x8xf32> -> vector<16x32xf32>
    %cst_122 = arith.constant dense<0.000000e+00> : vector<16x32xf32>
    %274 = tpu.matmul %273, %191, %cst_122 {dimension_numbers = #tpu.dot_dimension_numbers<[1], [0], [0], [1], [0, 0, 1, 1], [], []>} : vector<16x32xf32>, vector<32x32xf32>, vector<16x32xf32> -> vector<16x32xf32>
    %275 = vector.broadcast %192 : vector<1x32xf32> to vector<16x32xf32>
    %276 = arith.addf %274, %275 : vector<16x32xf32>
    %277 = arith.addf %188, %276 : vector<16x32xf32>
    %cst_123 = arith.constant dense<0.000000e+00> : vector<16xf32>
    %278 = vector.multi_reduction <add>, %277, %cst_123 [1] : vector<16x32xf32> to vector<16xf32>
    %279 = vector.shape_cast %278 : vector<16xf32> to vector<16x1xf32>
    %cst_124 = arith.constant 3.200000e+01 : f32
    %280 = vector.broadcast %cst_124 : f32 to vector<16x1xf32>
    %281 = arith.divf %279, %280 : vector<16x1xf32>
    %282 = vector.broadcast %281 : vector<16x1xf32> to vector<16x32xf32>
    %283 = arith.subf %277, %282 : vector<16x32xf32>
    %284 = arith.mulf %283, %283 : vector<16x32xf32>
    %cst_125 = arith.constant dense<0.000000e+00> : vector<16xf32>
    %285 = vector.multi_reduction <add>, %284, %cst_125 [1] : vector<16x32xf32> to vector<16xf32>
    %286 = vector.shape_cast %285 : vector<16xf32> to vector<16x1xf32>
    %cst_126 = arith.constant 3.200000e+01 : f32
    %287 = vector.broadcast %cst_126 : f32 to vector<16x1xf32>
    %288 = arith.divf %286, %287 : vector<16x1xf32>
    %cst_127 = arith.constant 9.99999996E-13 : f32
    %289 = vector.broadcast %cst_127 : f32 to vector<16x1xf32>
    %290 = arith.addf %288, %289 : vector<16x1xf32>
    %291 = math.rsqrt %290 : vector<16x1xf32>
    %292 = vector.broadcast %291 : vector<16x1xf32> to vector<16x32xf32>
    %293 = arith.mulf %283, %292 : vector<16x32xf32>
    %294 = vector.broadcast %193 : vector<1x32xf32> to vector<16x32xf32>
    %295 = arith.mulf %293, %294 : vector<16x32xf32>
    %296 = vector.broadcast %194 : vector<1x32xf32> to vector<16x32xf32>
    %297 = arith.addf %295, %296 : vector<16x32xf32>
    %cst_128 = arith.constant dense<0.000000e+00> : vector<16x64xf32>
    %298 = tpu.matmul %297, %195, %cst_128 {dimension_numbers = #tpu.dot_dimension_numbers<[1], [0], [0], [1], [0, 0, 1, 1], [], []>} : vector<16x32xf32>, vector<32x64xf32>, vector<16x64xf32> -> vector<16x64xf32>
    %299 = vector.broadcast %196 : vector<1x64xf32> to vector<16x64xf32>
    %300 = arith.addf %298, %299 : vector<16x64xf32>
    %cst_129 = arith.constant 5.000000e-01 : f32
    %301 = vector.broadcast %cst_129 : f32 to vector<16x64xf32>
    %302 = arith.mulf %301, %300 : vector<16x64xf32>
    %cst_130 = arith.constant 0.707106769 : f32
    %303 = vector.broadcast %cst_130 : f32 to vector<16x64xf32>
    %304 = arith.mulf %300, %303 : vector<16x64xf32>
    %305 = math.erf %304 : vector<16x64xf32>
    %cst_131 = arith.constant 1.000000e+00 : f32
    %306 = vector.broadcast %cst_131 : f32 to vector<16x64xf32>
    %307 = arith.addf %306, %305 : vector<16x64xf32>
    %308 = arith.mulf %302, %307 : vector<16x64xf32>
    %cst_132 = arith.constant dense<0.000000e+00> : vector<16x32xf32>
    %309 = tpu.matmul %308, %197, %cst_132 {dimension_numbers = #tpu.dot_dimension_numbers<[1], [0], [0], [1], [0, 0, 1, 1], [], []>} : vector<16x64xf32>, vector<64x32xf32>, vector<16x32xf32> -> vector<16x32xf32>
    %310 = vector.broadcast %198 : vector<1x32xf32> to vector<16x32xf32>
    %311 = arith.addf %309, %310 : vector<16x32xf32>
    %312 = arith.addf %297, %311 : vector<16x32xf32>
    %cst_133 = arith.constant dense<0.000000e+00> : vector<16xf32>
    %313 = vector.multi_reduction <add>, %312, %cst_133 [1] : vector<16x32xf32> to vector<16xf32>
    %314 = vector.shape_cast %313 : vector<16xf32> to vector<16x1xf32>
    %cst_134 = arith.constant 3.200000e+01 : f32
    %315 = vector.broadcast %cst_134 : f32 to vector<16x1xf32>
    %316 = arith.divf %314, %315 : vector<16x1xf32>
    %317 = vector.broadcast %316 : vector<16x1xf32> to vector<16x32xf32>
    %318 = arith.subf %312, %317 : vector<16x32xf32>
    %319 = arith.mulf %318, %318 : vector<16x32xf32>
    %cst_135 = arith.constant dense<0.000000e+00> : vector<16xf32>
    %320 = vector.multi_reduction <add>, %319, %cst_135 [1] : vector<16x32xf32> to vector<16xf32>
    %321 = vector.shape_cast %320 : vector<16xf32> to vector<16x1xf32>
    %cst_136 = arith.constant 3.200000e+01 : f32
    %322 = vector.broadcast %cst_136 : f32 to vector<16x1xf32>
    %323 = arith.divf %321, %322 : vector<16x1xf32>
    %cst_137 = arith.constant 9.99999996E-13 : f32
    %324 = vector.broadcast %cst_137 : f32 to vector<16x1xf32>
    %325 = arith.addf %323, %324 : vector<16x1xf32>
    %326 = math.rsqrt %325 : vector<16x1xf32>
    %327 = vector.broadcast %326 : vector<16x1xf32> to vector<16x32xf32>
    %328 = arith.mulf %318, %327 : vector<16x32xf32>
    %329 = vector.broadcast %199 : vector<1x32xf32> to vector<16x32xf32>
    %330 = arith.mulf %328, %329 : vector<16x32xf32>
    %331 = vector.broadcast %200 : vector<1x32xf32> to vector<16x32xf32>
    %332 = arith.addf %330, %331 : vector<16x32xf32>
    %333 = tpu.iota {dimensions = array<i32: 0>} : vector<2x16xi32>
    %334 = tpu.iota {dimensions = array<i32: 1>} : vector<2x16xi32>
    %c8_i32 = arith.constant 8 : i32
    %335 = vector.broadcast %c8_i32 : i32 to vector<2x16xi32>
    %336 = arith.muli %333, %335 : vector<2x16xi32>
    %337 = arith.cmpi eq, %334, %336 : vector<2x16xi32>
    %338 = arith.extui %337 : vector<2x16xi1> to vector<2x16xi32>
    %339 = arith.sitofp %338 : vector<2x16xi32> to vector<2x16xf32>
    %cst_138 = arith.constant dense<0.000000e+00> : vector<2x32xf32>
    %340 = tpu.matmul %339, %332, %cst_138 {dimension_numbers = #tpu.dot_dimension_numbers<[1], [0], [0], [1], [0, 0, 1, 1], [], []>} : vector<2x16xf32>, vector<16x32xf32>, vector<2x32xf32> -> vector<2x32xf32>
    %c0_139 = arith.constant 0 : index
    %c0_140 = arith.constant 0 : index
    %341 = vector.load %arg32[%c0_139, %c0_140] : memref<32x32xf32, #tpu.memory_space<vmem>>, vector<32x32xf32>
    %cst_141 = arith.constant dense<0.000000e+00> : vector<2x32xf32>
    %342 = tpu.matmul %340, %341, %cst_141 {dimension_numbers = #tpu.dot_dimension_numbers<[1], [0], [0], [1], [0, 0, 1, 1], [], []>} : vector<2x32xf32>, vector<32x32xf32>, vector<2x32xf32> -> vector<2x32xf32>
    %c0_142 = arith.constant 0 : index
    %c0_143 = arith.constant 0 : index
    %343 = vector.load %arg33[%c0_142, %c0_143] : memref<1x32xf32, #tpu.memory_space<vmem>>, vector<1x32xf32>
    %344 = vector.broadcast %343 : vector<1x32xf32> to vector<2x32xf32>
    %345 = arith.addf %342, %344 : vector<2x32xf32>
    %346 = math.tanh %345 : vector<2x32xf32>
    %c0_144 = arith.constant 0 : index
    %c0_145 = arith.constant 0 : index
    %347 = vector.load %arg34[%c0_144, %c0_145] : memref<2x32xf32, #tpu.memory_space<vmem>>, vector<2x32xf32>
    tpu.vector_store %arg34[%c0_144, %c0_145], %346 {strides = array<i32>} : memref<2x32xf32, #tpu.memory_space<vmem>>, vector<2x32xf32>,
    return
  }
}

</mosaic_0001>

<bundles_post_ra>
// kernel: transformer_encoder_forward.1
= control target key start
LH: loop header
LB: loop body
LE: loop exit
PB: predicated region body
PF: predicated region fallthrough
CT: control target
= control target key end

     0   :  { %s4108_s6 = smov 1   ;;  %s4109_s10 = smov 2   ;;  %s4741_s0 = inlined_call_operand.smem [shape: u32[35], index: -1, kind: input, shape index: {}] }
   0x1   :  { %s4170_s5 = sld [smem:[%s4741_s0]]   ;;  %s4110_s14 = smov 3  }
   0x2   :  { %s4175_s9 = sld [smem:[%s4741_s0 + %s4108_s6]]   ;;  %s4111_s18 = smov 4  }
   0x3   :  { %s4180_s13 = sld [smem:[%s4741_s0 + %s4109_s10]]   ;;  %s4112_s22 = smov 5  }
   0x4   :  { %s4185_s17 = sld [smem:[%s4741_s0 + %s4110_s14]]   ;;  %s4113_s26 = smov 6  }
   0x5   :  { %s4190_s21 = sld [smem:[%s4741_s0 + %s4111_s18]]   ;;  %s4114_s30 = smov 7  }
   0x6   :  { %s4195_s25 = sld [smem:[%s4741_s0 + %s4112_s22]]   ;;  %s4115_s4 = smov 8  }
   0x7   :  { %s4200_s29 = sld [smem:[%s4741_s0 + %s4113_s26]]   ;;  %s4116_s10 = smov 9  }
   0x8   :  { %s4205_s3 = sld [smem:[%s4741_s0 + %s4114_s30]]   ;;  %s4117_s15 = smov 10  }
   0x9   :  { %s4210_s8 = sld [smem:[%s4741_s0 + %s4115_s4]]   ;;  %s4118_s20 = smov 11  }
   0xa   :  { %s4215_s14 = sld [smem:[%s4741_s0 + %s4116_s10]]   ;;  %s4119_s26 = smov 12  }
   0xb   :  { %s4220_s19 = sld [smem:[%s4741_s0 + %s4117_s15]]   ;;  %s4120_s1 = smov 13  }
   0xc   :  { %s4225_s24 = sld [smem:[%s4741_s0 + %s4118_s20]]   ;;  %s4121_s7 = smov 14  }
   0xd   :  { %s4230_s30 = sld [smem:[%s4741_s0 + %s4119_s26]]   ;;  %s4122_s15 = smov 15  }
   0xe   :  { %s4235_s6 = sld [smem:[%s4741_s0 + %s4120_s1]]   ;;  %s4123_s22 = smov 16  }
   0xf   :  { %s4240_s12 = sld [smem:[%s4741_s0 + %s4121_s7]]   ;;  %s4124_s28 = smov 17  }
  0x10   :  { %s4245_s20 = sld [smem:[%s4741_s0 + %s4122_s15]]   ;;  %s4125_s7 = smov 18  }
  0x11   :  { %s4250_s27 = sld [smem:[%s4741_s0 + %s4123_s22]]   ;;  %s4126_s15 = smov 19  }
  0x12   :  { %s4255_s4 = sld [smem:[%s4741_s0 + %s4124_s28]]   ;;  %s4127_s22 = smov 20  }
  0x13   :  { %s4128_s28 = smov 21  }
  0x14   :  { %4747 = sst [smem:[#allocation5_spill]] %s4235_s6 }
  0x15   :  { %s4260_s6 = sld [smem:[%s4741_s0 + %s4125_s7]]   ;;  %s4129_s7 = smov 22  }
  0x16   :  { %4748 = sst [smem:[#allocation6_spill]] %s4245_s20 }
  0x17   :  { %4749 = sst [smem:[#allocation7_spill]] %s4250_s27 }
  0x18   :  { %4750 = sst [smem:[#allocation8_spill]] %s4255_s4 }
  0x19   :  { %s4265_s20 = sld [smem:[%s4741_s0 + %s4126_s15]]   ;;  %s4130_s15 = smov 23  }
  0x1a   :  { %s4270_s27 = sld [smem:[%s4741_s0 + %s4127_s22]]   ;;  %s4131_s22 = smov 24  }
  0x1b   :  { %4751 = sst [smem:[#allocation9_spill]] %s4260_s6 }
  0x1c   :  { %s4275_s4 = sld [smem:[%s4741_s0 + %s4128_s28]]   ;;  %s4132_s28 = smov 25  }
  0x1d   :  { %s4280_s6 = sld [smem:[%s4741_s0 + %s4129_s7]]   ;;  %s4133_s7 = smov 26  }
  0x1f   :  { %4752 = sst [smem:[#allocation10_spill]] %s4265_s20 }
  0x20   :  { %4753 = sst [smem:[#allocation11_spill]] %s4270_s27 }
  0x21   :  { %s4285_s20 = sld [smem:[%s4741_s0 + %s4130_s15]]   ;;  %s4134_s15 = smov 27  }
  0x22   :  { %4754 = sst [smem:[#allocation12_spill]] %s4275_s4 }
  0x23   :  { %4755 = sst [smem:[#allocation13_spill]] %s4280_s6 }
  0x24   :  { %s4290_s27 = sld [smem:[%s4741_s0 + %s4131_s22]]   ;;  %s4135_s22 = smov 28  }
  0x25   :  { %s4295_s4 = sld [smem:[%s4741_s0 + %s4132_s28]]   ;;  %s4136_s28 = smov 29  }
  0x26   :  { %s4300_s6 = sld [smem:[%s4741_s0 + %s4133_s7]]   ;;  %s4137_s7 = smov 30  }
  0x27   :  { %4756 = sst [smem:[#allocation14_spill]] %s4285_s20 }
  0x28   :  { %s4305_s20 = sld [smem:[%s4741_s0 + %s4134_s15]]   ;;  %s4138_s15 = smov 31  }
  0x2a   :  { %4757 = sst [smem:[#allocation15_spill]] %s4290_s27 }
  0x2b   :  { %4758 = sst [smem:[#allocation16_spill]] %s4295_s4 }
  0x2c   :  { %4759 = sst [smem:[#allocation17_spill]] %s4300_s6 }
  0x2d   :  { %s4310_s27 = sld [smem:[%s4741_s0 + %s4135_s22]]   ;;  %s4139_s22 = smov 32  }
  0x2e   :  { %4760 = sst [smem:[#allocation18_spill]] %s4305_s20 }
  0x2f   :  { %s4315_s4 = sld [smem:[%s4741_s0 + %s4136_s28]]   ;;  %s4140_s28 = smov 33  }
  0x30   :  { %s4320_s6 = sld [smem:[%s4741_s0 + %s4137_s7]]   ;;  %s4141_s7 = smov 34  }
  0x31   :  { %s4325_s20 = sld [smem:[%s4741_s0 + %s4138_s15]]  }
  0x33   :  { %4761 = sst [smem:[#allocation19_spill]] %s4310_s27 }
  0x34   :  { %s4330_s27 = sld [smem:[%s4741_s0 + %s4139_s22]]  }
  0x35   :  { %4762 = sst [smem:[#allocation20_spill]] %s4315_s4 }
  0x36   :  { %4763 = sst [smem:[#allocation21_spill]] %s4320_s6 }
  0x37   :  { %s4335_s4 = sld [smem:[%s4741_s0 + %s4140_s28]]  }
  0x38   :  { %s4340_s6 = sld [smem:[%s4741_s0 + %s4141_s7]]  }
  0x39   :  { %v143_v0 = vld [vmem:[%s4170_s5] sm:$0xff]  ;;  %v4142_v2 = vmov 0   ;;  %v164_v3 = vld [vmem:[%s4190_s21 + $0x8] sm:$0xff]  ;;  %v165_v4 = vld [vmem:[%s4190_s21 + $0x10] sm:$0xff] }
  0x3a   :  { %v163_v1 = vld [vmem:[%s4190_s21] sm:$0xff]  ;;  %3908 = vset.pattern.permute.xlu0 %v4142_v2  ;;  %v166_v5 = vld [vmem:[%s4190_s21 + $0x18] sm:$0xff]  ;;  %3914 = vset.pattern.permute.xlu1 %v4142_v2  ;;  %v144_v8 = vld [vmem:[%s4170_s5 + $0x8] sm:$0xff] }
  0x3b   :  { %152 = vperm.xlu0 %3908, %v143_v0   ;;  %v3661_v6 = vpack.c.bf16 %v164_v3, %v163_v1  ;;  %v3665_v7 = vpack.c.bf16 %v166_v5, %v165_v4  ;;  %v167_v9 = vld [vmem:[%s4190_s21 + $0x20] sm:$0xff]  ;;  %v168_v10 = vld [vmem:[%s4190_s21 + $0x28] sm:$0xff] }
  0x3d   :  { %3662 = vmatprep.subr.bf16.mxu0 %v3661_v6 }
  0x3e   :  { %74 = vsyncpa [#allocation3], 0  ;;  %3664 = vmatpush3.bf16.msra.mxu0 %v3661_v6  ;;  %v3669_v11 = vpack.c.bf16 %v168_v10, %v167_v9  ;;  %v169_v12 = vld [vmem:[%s4190_s21 + $0x30] sm:$0xff]  ;;  %v170_v13 = vld [vmem:[%s4190_s21 + $0x38] sm:$0xff]  ;;  %vm185_vm0 = vcmask 1043456   ;;  %v149_v22 = vlaneseq  ;;  %vm178_vm1 = vcmask 818176  }
  0x3f   :  { %155 = vperm.xlu0 %3908, %v144_v8   ;;  %3666 = vmatprep.subr.bf16.mxu0 %v3665_v7  ;;  %v3673_v14 = vpack.c.bf16 %v170_v13, %v169_v12  ;;  %v171_v15 = vld [vmem:[%s4190_s21 + $0x40] sm:$0xff]  ;;  %v172_v16 = vld [vmem:[%s4190_s21 + $0x48] sm:$0xff]  ;;  %v173_v18 = vld [vmem:[%s4190_s21 + $0x50] sm:$0xff]  ;;  %v4143_v25 = vmov 0.0   ;;  %vm266_vm4 = vcmask 261120   ;;  %vm456_vm5 = vcmask 64512  }
  0x40   :  { %v3677_v17 = vpack.c.bf16 %v172_v16, %v171_v15  ;;  %v174_v19 = vld [vmem:[%s4190_s21 + $0x58] sm:$0xff]  ;;  %v175_v21 = vld [vmem:[%s4190_s21 + $0x60] sm:$0xf]  ;;  %v4360_v23 = vand.u32 127, %v149_v22  ;;  %v177_v31 = vld [vmem:[%s4195_s25 + $0x8] sm:$0xff]  ;;  %s4144_s0 = smov 96  }
  0x41   :  { %v3681_v20 = vpack.c.bf16 %v174_v19, %v173_v18  ;;  %v176_v29 = vld [vmem:[%s4195_s25] sm:$0xff]  ;;  %v334_v48 = vld [vmem:[%s4210_s8 + $0x8] sm:$0xff]  ;;  %v335_v49 = vld [vmem:[%s4210_s8 + $0x10] sm:$0xff]  ;;  %vm542_vm13 = vcmask 130048   ;;  %s4146_s5 = smov 120   ;;  %s4150_s21 = smov 112  }
  0x42   :  { %3668 = vmatpush3.bf16.msra.mxu0 %v3665_v7  ;;  %v333_v47 = vld [vmem:[%s4210_s8] sm:$0xff]  ;;  %v336_v51 = vld [vmem:[%s4210_s8 + $0x18] sm:$0xff]  ;;  %vm4399_vm6 = vmpackc.low %vm456_vm5, %vm456_vm5  ;;  %s4151_s25 = smov 48   ;;  %s4154_s8 = smov 104   ;;  %vm1280_vm14 = vcmask 195584   ;;  %vm1517_vm15 = vcmask 523264  }
  0x43   :  { %3670 = vmatprep.subr.bf16.mxu0 %v3669_v11  ;;  %v3685_v50 = vpack.c.bf16 %v334_v48, %v333_v47  ;;  %v3689_v52 = vpack.c.bf16 %v336_v51, %v335_v49  ;;  %v3168_v60 = vld [vmem:[%s4200_s29] ss:$0 sm:$0xff]  ;;  %s4152_s29 = smov 72   ;;  %s4156_s15 = smov 8  }
  0x44   :  { %v3169_v62 = vld [vmem:[%s4205_s3] ss:$0 sm:$0xff]  ;;  %s4153_s3 = smov 56   ;;  %s4157_s16 = smov 16  }
  0x45   :  { %3686 = vmatprep.subr.bf16.mxu1 %v3685_v50  ;;  %v3171_v6 = vld [vmem:[%s4215_s14] ss:$0 sm:$0xff]  ;;  %s4155_s14 = smov 40   ;;  %s4158_s18 = smov 24  }
  0x46   :  { %3672 = vmatpush3.bf16.msra.mxu0 %v3669_v11  ;;  %3688 = vmatpush3.bf16.msra.mxu1 %v3685_v50  ;;  %v146_v13 = vld [vmem:[%s4180_s13] sm:$0xff]  ;;  %s4770_s22 = sld [smem:[#allocation11_spill]]  ;;  %s4771_s23 = sld [smem:[#allocation9_spill]] }
  0x47   :  { %3674 = vmatprep.subr.bf16.mxu0 %v3673_v14  ;;  %3690 = vmatprep.subr.bf16.mxu1 %v3689_v52  ;;  %s4772_s26 = sld [smem:[#allocation10_spill]]  ;;  %s4773_s28 = sld [smem:[#allocation12_spill]] }
  0x48   :  { %s4774_s1 = sld [smem:[#allocation13_spill]]  ;;  %s4775_s2 = sld [smem:[#allocation14_spill]] }
  0x49   :  { %s4776_s7 = sld [smem:[#allocation17_spill]]  ;;  %s4777_s10 = sld [smem:[#allocation15_spill]] }
  0x4a   :  { %3676 = vmatpush3.bf16.msra.mxu0 %v3673_v14  ;;  %3692 = vmatpush3.bf16.msra.mxu1 %v3689_v52  ;;  %v147_v14 = vld [vmem:[%s4180_s13 + $0x8] sm:$0xff]  ;;  %s4148_s13 = smov 88   ;;  %s4778_s11 = sld [smem:[#allocation16_spill]] }
  0x4b   :  { %3678 = vmatprep.subr.bf16.mxu0 %v3677_v17 }
  0x4e   :  { %3680 = vmatpush3.bf16.msra.mxu0 %v3677_v17 }
  0x4f   :  { %3682 = vmatprep.subr.bf16.mxu0 %v3681_v20 }
  0x52   :  { %3684 = vmatpush3.bf16.msra.mxu0 %v3681_v20 }
  0x53   :  { %3422 = vmatprep.subr.msk.mxu0 %vm185_vm0, %v175_v21 }
  0x56   :  { %3423 = vmatpush3.msk.msra.mxu0 %vm185_vm0, %v175_v21  ;;  %v145_v21 = vld [vmem:[%s4175_s9] sm:$0x1]  ;;  %s4147_s9 = smov 64   ;;  %vm4160_vm0 = vmmov 0  }
  0x57   :  { %vm310_vm7 = vcmp.ne.s32.totalorder %v145_v21, 0 }
  0xba   :  { %v153_v24 = vpop.permute.xlu0 %152 }
  0xbb   :  { %vm157_vm2 = vcmp.eq.s32.totalorder %v4360_v23, %v153_v24  ;;  %v4413_v24 = vshrl.u32 %v149_v22, 7 }
  0xbc   :  { %v3163_v26 = vsel %vm157_vm2, 1.0, %v4143_v25  ;;  %vm3113_vm2 = vcmask 254976  }
  0xbd   :  { %3424 = vmatprep.mubr.msk.f32.mxu0 %vm178_vm1, %v3163_v26 }
  0xbe   :  { %v156_v27 = vpop.permute.xlu0 %155 }
  0xbf   :  { %vm158_vm3 = vcmp.eq.s32.totalorder %v4360_v23, %v156_v27  ;;  %v326_v27 = vsub.s32 0, %v4413_v24 }
  0xc0   :  { %v3164_v28 = vsel %vm158_vm3, 1.0, %v4143_v25 }
  0xc1   :  { %3425 = vmatmul.mubr.msk.f32.vlgmr.msra.gmra.mrb[0].mxu0 %vm178_vm1, %v3164_v28  ;;  %v323_v28 = vsel %vm310_vm7, 1, %v4142_v2 }
 0x194   :  { %v3426_v30 = vpop.f32.mrb[0].mxu0 }
 0x195   :  { %v255_v32 = vpop.f32.mrb[1].mxu0  ;;  %v261_v34 = vadd.f32 %v3426_v30, %v177_v31  ;;  %v3170_v30 = vld [vmem:[%s4185_s17] ss:$0 sm:$0xff]  ;;  %s4149_s17 = smov 80  }
 0x196   :  { %v256_v33 = vadd.f32 %v255_v32, %v176_v29  ;;  %v327_v29 = vrot.slane %v323_v28, %v326_v27  ;;  %v4145_v32 = vmov -1e+30  }
 0x197   :  { %v270_v36 = vsel %vm266_vm4, %v261_v34, 0.0 }
 0x198   :  { %v267_v35 = vsel %vm266_vm4, %v256_v33, 0.0  ;;  %vm328_vm8 = vcmp.eq.s32.totalorder %v327_v29, 1 }
 0x199   :  { %268 = vadd.xlane.f32.xlu1 %v267_v35 }
 0x19d   :  { %271 = vadd.xlane.f32.xlu1 %v270_v36 }
 0x226   :  { %v269_v37 = vpop.xlane.xlu1 %268 }
 0x227   :  { %v274_v38 = vmul.f32 0.03125, %v269_v37 }
 0x229   :  { %v276_v39 = vsub.f32 %v256_v33, %v274_v38 }
 0x22a   :  { %v272_v40 = vpop.xlane.xlu1 %271 }
 0x22b   :  { %v275_v41 = vmul.f32 0.03125, %v272_v40  ;;  %v278_v42 = vmul.f32 %v276_v39, %v276_v39 }
 0x22d   :  { %v277_v43 = vsub.f32 %v261_v34, %v275_v41  ;;  %v280_v44 = vsel %vm266_vm4, %v278_v42, 0.0 }
 0x22e   :  { %281 = vadd.xlane.f32.xlu0 %v280_v44 }
 0x22f   :  { %v279_v45 = vmul.f32 %v277_v43, %v277_v43 }
 0x231   :  { %v283_v46 = vsel %vm266_vm4, %v279_v45, 0.0 }
 0x232   :  { %284 = vadd.xlane.f32.xlu1 %v283_v46 }
 0x2bb   :  { %v282_v53 = vpop.xlane.xlu0 %281 }
 0x2bc   :  { %v286_v54 = vmul.f32 0.03125, %v282_v53 }
 0x2be   :  { %v288_v55 = vadd.f32 1e-12, %v286_v54 }
 0x2bf   :  { %v285_v56 = vpop.xlane.xlu1 %284 }
 0x2c0   :  { %3990 = vrsqrt.f32 %v288_v55  ;;  %v287_v57 = vmul.f32 0.03125, %v285_v56 }
 0x2c2   :  { %v289_v58 = vadd.f32 1e-12, %v287_v57 }
 0x2c4   :  { %3992 = vrsqrt.f32 %v289_v58 }
 0x2ca   :  { %v3991_v59 = vpop.eup %3990 }
 0x2cb   :  { %v292_v61 = vmul.f32 %v3991_v59, %v276_v39 }
 0x2cd   :  { %v300_v63 = vmul.f32 %v3168_v60, %v292_v61 }
 0x2ce   :  { %v3993_v0 = vpop.eup %3992 }
 0x2cf   :  { %v293_v1 = vmul.f32 %v3993_v0, %v277_v43  ;;  %v4378_v3 = vadd.f32 %v3169_v62, %v300_v63 }
 0x2d1   :  { %v301_v4 = vmul.f32 %v3168_v60, %v293_v1  ;;  %3435 = vmatprep.mubr.msk.f32.mxu1 %vm266_vm4, %v4378_v3 }
 0x2d3   :  { %v4382_v5 = vadd.f32 %v3169_v62, %v301_v4 }
 0x2d5   :  { %3436 = vmatmul.mubr.msk.f32.vlgmr.msra.gmra.mrb[0].mxu1 %vm266_vm4, %v4382_v5 }
 0x3a8   :  { %v3437_v7 = vpop.f32.mrb[0].mxu1 }
 0x3a9   :  { %v445_v8 = vadd.f32 %v3437_v7, %v3171_v6  ;;  %v439_v9 = vpop.f32.mrb[1].mxu1 }
 0x3aa   :  { %v440_v10 = vadd.f32 %v3171_v6, %v439_v9 }
 0x3ab   :  { %v4407_v20 = vmul.f32 0.35355338, %v445_v8 }
 0x3ac   :  { %v4387_v11 = vpack.i.bf16 %v445_v8, %v440_v10  ;;  %v4389_v12 = vmul.f32 0.35355338, %v440_v10 }
 0x3ae   :  { %3910 = vrot.lane.b32.xlu1 %v4387_v11, %s4144_s0  ;;  %3442 = vmatprep.mubr.msk.f32.mxu1 %vm456_vm5, %v4389_v12 }
 0x3b2   :  { %312 = vperm.xlu1 %3914, %v146_v13  }
 0x3b6   :  { %315 = vperm.xlu1 %3914, %v147_v14  }
 0x420   :  { %v3911_v15 = vpop.permute.xlu1 %3910 }
 0x421   :  { %v3913_v16 = vunpack.i.h.bf16 %v3911_v15  ;;  %v3912_v17 = vunpack.i.l.bf16 %v3911_v15 }
 0x423   :  { %v3693_v19 = vpack.c.bf16 %v3913_v16, %v3912_v17 }
 0x425   :  { %3695 = vmatprep.subr.msk.bf16.mxu1 %vm4399_vm6, %v3693_v19 }
 0x426   :  { %3698 = vmatpush3.bf16.xpose.msk.msra.mxu1 %vm4399_vm6, %v3693_v19 }
 0x42d   :  { %3443 = vmatmul.mubr.msk.f32.vlgmr.msra.gmra.mrb[2].mxu1 %vm456_vm5, %v4407_v20 }
 0x431   :  { %v313_v26 = vpop.permute.xlu1 %312 }
 0x432   :  { %vm321_vm10 = vcmp.eq.s32.totalorder %v313_v26, %v3170_v30 }
 0x433   :  { %vm329_vm12 = vmand %vm321_vm10, %vm328_vm8 }
 0x434   :  { %v4420_v22 = vsel %vm329_vm12, 0.0, %v4145_v32 }
 0x435   :  { %v316_v31 = vpop.permute.xlu1 %315 }
 0x436   :  { %vm322_vm9 = vcmp.eq.s32.totalorder %v316_v31, %v3170_v30 }
 0x437   :  { %vm330_vm11 = vmand %vm322_vm9, %vm328_vm8 }
 0x438   :  { %v4418_v33 = vsel %vm330_vm11, 0.0, %v4145_v32 }
 0x500   :  { %v3444_v34 = vpop.f32.mrb[2].mxu1 }
 0x501   :  { %v539_v35 = vadd.f32 %v3444_v34, %v4418_v33  ;;  %v533_v36 = vpop.f32.mrb[3].mxu1 }
 0x502   :  { %v534_v2 = vadd.f32 %v533_v36, %v4420_v22 }
 0x503   :  { %v546_v37 = vsel %vm542_vm13, %v539_v35, -inf }
 0x504   :  { %547 = vmax.xlane.f32.xlu0 %v546_v37  ;;  %v543_v38 = vsel %vm542_vm13, %v534_v2, -inf }
 0x505   :  { %544 = vmax.xlane.f32.xlu1 %v543_v38 }
 0x516   :  { %652 = vrot.lane.b32.xlu1 %v4389_v12, %s4146_s5 }
 0x51a   :  { %3916 = vrot.lane.b32.xlu0 %v4387_v11, %s4147_s9 }
 0x51e   :  { %3921 = vrot.lane.b32.xlu0 %v4387_v11, %s4148_s13 }
 0x591   :  { %v548_v39 = vpop.xlane.xlu0 %547 }
 0x592   :  { %v550_v40 = vsub.f32 %v539_v35, %v548_v39  ;;  %v545_v41 = vpop.xlane.xlu1 %544 }
 0x593   :  { %v549_v42 = vsub.f32 %v534_v2, %v545_v41 }
 0x594   :  { %v553_v43 = vmul.f32 1.442695, %v550_v40 }
 0x595   :  { %v551_v44 = vmul.f32 1.442695, %v549_v42  ;;  %v3917_v45 = vpop.permute.xlu0 %3916 }
 0x596   :  { %3994 = vpow2.f32 %v553_v43  ;;  %v3919_v46 = vunpack.i.h.bf16 %v3917_v45  ;;  %v3918_v47 = vunpack.i.l.bf16 %v3917_v45  ;;  %v653_v4 = vpop.permute.xlu1 %652 }
 0x597   :  { %3996 = vpow2.f32 %v551_v44 }
 0x598   :  { %v3699_v48 = vpack.c.bf16 %v3919_v46, %v3918_v47 }
 0x599   :  { %v3922_v49 = vpop.permute.xlu0 %3921 }
 0x59a   :  { %v3924_v50 = vunpack.i.h.bf16 %v3922_v49  ;;  %v3923_v51 = vunpack.i.l.bf16 %v3922_v49  ;;  %3700 = vmatprep.subr.bf16.mxu1 %v3699_v48 }
 0x59b   :  { %3702 = vmatpush3.bf16.msra.mxu1 %v3699_v48 }
 0x59c   :  { %v3703_v52 = vpack.c.bf16 %v3924_v50, %v3923_v51 }
 0x59e   :  { %3705 = vmatprep.subr.msk.bf16.mxu1 %vm4399_vm6, %v3703_v52 }
 0x5a0   :  { %v3995_v53 = vpop.eup %3994 }
 0x5a1   :  { %v558_v54 = vsel %vm542_vm13, %v3995_v53, 0.0  ;;  %v3997_v55 = vpop.eup %3996 }
 0x5a2   :  { %559 = vadd.xlane.f32.xlu0 %v558_v54  ;;  %v555_v56 = vsel %vm542_vm13, %v3997_v55, 0.0 }
 0x5a6   :  { %556 = vadd.xlane.f32.xlu0 %v555_v56 }
 0x5bc   :  { %3926 = vrot.lane.b32.xlu0 %v4387_v11, %s4149_s17 }
 0x5c0   :  { %654 = vrot.lane.b32.xlu0 %v4407_v20, %s4146_s5 }
 0x5c4   :  { %852 = vrot.lane.b32.xlu0 %v4389_v12, %s4150_s21 }
 0x5c8   :  { %854 = vrot.lane.b32.xlu0 %v4407_v20, %s4150_s21 }
 0x62f   :  { %v560_v57 = vpop.xlane.xlu0 %559 }
 0x630   :  { %3998 = vrcp.f32 %v560_v57 }
 0x633   :  { %v557_v58 = vpop.xlane.xlu0 %556 }
 0x634   :  { %4000 = vrcp.f32 %v557_v58 }
 0x637   :  { %v3927_v59 = vpop.permute.xlu0 %3926 }
 0x638   :  { %v3929_v62 = vunpack.i.h.bf16 %v3927_v59  ;;  %v3928_v63 = vunpack.i.l.bf16 %v3927_v59 }
 0x63a   :  { %v3999_v60 = vpop.eup %3998  ;;  %v3713_v6 = vpack.c.bf16 %v3929_v62, %v3928_v63 }
 0x63b   :  { %v564_v1 = vmul.f32 %v3999_v60, %v3995_v53  ;;  %v655_v7 = vpop.permute.xlu0 %654 }
 0x63e   :  { %v4001_v61 = vpop.eup %4000 }
 0x63f   :  { %v563_v0 = vmul.f32 %v4001_v61, %v3997_v55  ;;  %v853_v8 = vpop.permute.xlu0 %852 }
 0x641   :  { %3449 = vmatprep.mubr.msk.f32.mxu1 %vm542_vm13, %v563_v0 }
 0x642   :  { %3450 = vmatmul.mubr.msk.f32.vlgmr.msra.gmra.mrb[4].mxu1 %vm542_vm13, %v564_v1 }
 0x643   :  { %3708 = vmatpush3.bf16.xpose.msk.msra.mxu1 %vm4399_vm6, %v3703_v52  ;;  %3456 = vmatprep.mubr.msk.f32.mxu1 %vm456_vm5, %v653_v4  ;;  %v855_v9 = vpop.permute.xlu0 %854 }
 0x644   :  { %3715 = vmatprep.subr.msk.bf16.mxu1 %vm4399_vm6, %v3713_v6 }
 0x64a   :  { %3457 = vmatmul.mubr.msk.f32.vlgmr.msra.gmra.mrb[6].mxu1 %vm456_vm5, %v655_v7 }
 0x64b   :  { %3718 = vmatpush3.bf16.xpose.msk.msra.mxu1 %vm4399_vm6, %v3713_v6  ;;  %3470 = vmatprep.mubr.msk.f32.mxu1 %vm456_vm5, %v853_v8 }
 0x652   :  { %3471 = vmatmul.mubr.msk.f32.vlgmr.msra.gmra.mrb[8].mxu1 %vm456_vm5, %v855_v9 }
 0x715   :  { %v4456_v10 = vpop.f32.mrb[4].mxu1 }
 0x716   :  { %v4458_v13 = vpop.f32.mrb[5].mxu1 }
 0x71d   :  { %v3458_v14 = vpop.f32.mrb[6].mxu1 }
 0x71e   :  { %v740_v15 = vadd.f32 %v3458_v14, %v4418_v33  ;;  %v734_v16 = vpop.f32.mrb[7].mxu1 }
 0x71f   :  { %v735_v17 = vadd.f32 %v734_v16, %v4420_v22 }
 0x720   :  { %v746_v19 = vsel %vm542_vm13, %v740_v15, -inf }
 0x721   :  { %747 = vmax.xlane.f32.xlu0 %v746_v19  ;;  %v743_v21 = vsel %vm542_vm13, %v735_v17, -inf }
 0x722   :  { %744 = vmax.xlane.f32.xlu1 %v743_v21 }
 0x725   :  { %v3472_v26 = vpop.f32.mrb[8].mxu1 }
 0x726   :  { %v940_v27 = vadd.f32 %v3472_v26, %v4418_v33  ;;  %v934_v28 = vpop.f32.mrb[9].mxu1 }
 0x727   :  { %v935_v29 = vadd.f32 %v934_v28, %v4420_v22 }
 0x728   :  { %v946_v30 = vsel %vm542_vm13, %v940_v27, -inf }
 0x729   :  { %947 = vmax.xlane.f32.xlu1 %v946_v30  ;;  %v943_v31 = vsel %vm542_vm13, %v935_v29, -inf }
 0x72a   :  { %944 = vmax.xlane.f32.xlu0 %v943_v31 }
 0x7ae   :  { %v748_v32 = vpop.xlane.xlu0 %747 }
 0x7af   :  { %v750_v34 = vsub.f32 %v740_v15, %v748_v32  ;;  %v745_v35 = vpop.xlane.xlu1 %744 }
 0x7b0   :  { %v749_v36 = vsub.f32 %v735_v17, %v745_v35 }
 0x7b1   :  { %v753_v2 = vmul.f32 1.442695, %v750_v34 }
 0x7b2   :  { %v751_v37 = vmul.f32 1.442695, %v749_v36 }
 0x7b3   :  { %4002 = vpow2.f32 %v753_v2 }
 0x7b4   :  { %4004 = vpow2.f32 %v751_v37 }
 0x7b6   :  { %v948_v38 = vpop.xlane.xlu1 %947 }
 0x7b7   :  { %v950_v39 = vsub.f32 %v940_v27, %v948_v38  ;;  %v945_v40 = vpop.xlane.xlu0 %944 }
 0x7b8   :  { %v949_v41 = vsub.f32 %v935_v29, %v945_v40 }
 0x7b9   :  { %v953_v42 = vmul.f32 1.442695, %v950_v39 }
 0x7ba   :  { %v951_v43 = vmul.f32 1.442695, %v949_v41 }
 0x7bb   :  { %4006 = vpow2.f32 %v953_v42 }
 0x7bc   :  { %4008 = vpow2.f32 %v951_v43 }
 0x7bd   :  { %v4003_v44 = vpop.eup %4002 }
 0x7be   :  { %v4005_v45 = vpop.eup %4004  ;;  %v758_v46 = vsel %vm542_vm13, %v4003_v44, 0.0 }
 0x7bf   :  { %759 = vadd.xlane.f32.xlu1 %v758_v46  ;;  %v755_v47 = vsel %vm542_vm13, %v4005_v45, 0.0 }
 0x7c0   :  { %756 = vadd.xlane.f32.xlu0 %v755_v47 }
 0x7c5   :  { %v4007_v48 = vpop.eup %4006 }
 0x7c6   :  { %v4009_v49 = vpop.eup %4008  ;;  %v958_v50 = vsel %vm542_vm13, %v4007_v48, 0.0 }
 0x7c7   :  { %959 = vadd.xlane.f32.xlu1 %v958_v50  ;;  %v955_v51 = vsel %vm542_vm13, %v4009_v49, 0.0 }
 0x7c8   :  { %956 = vadd.xlane.f32.xlu0 %v955_v51 }
 0x7d8   :  { %3936 = vrot.lane.b32.xlu1 %v4387_v11, %s4151_s25 }
 0x7dc   :  { %3941 = vrot.lane.b32.xlu1 %v4387_v11, %s4152_s29 }
 0x7de   :  { %3931 = vrot.lane.b32.xlu0 %v4387_v11, %s4153_s3 }
 0x7e0   :  { %1054 = vrot.lane.b32.xlu1 %v4407_v20, %s4154_s8 }
 0x7e2   :  { %1052 = vrot.lane.b32.xlu0 %v4389_v12, %s4154_s8 }
 0x84c   :  { %v760_v53 = vpop.xlane.xlu1 %759 }
 0x84d   :  { %v757_v52 = vpop.xlane.xlu0 %756 }
 0x84e   :  { %4010 = vrcp.f32 %v757_v52 }
 0x84f   :  { %4012 = vrcp.f32 %v760_v53 }
 0x854   :  { %v960_v54 = vpop.xlane.xlu1 %959 }
 0x855   :  { %v957_v55 = vpop.xlane.xlu0 %956 }
 0x856   :  { %4014 = vrcp.f32 %v957_v55  ;;  %v339_v55 = vld [vmem:[%s4220_s19 + $0x8] sm:$0xff] }
 0x857   :  { %4016 = vrcp.f32 %v960_v54  ;;  %v338_v54 = vld [vmem:[%s4220_s19] sm:$0xff] }
 0x858   :  { %v4011_v56 = vpop.eup %4010  ;;  %v3937_v57 = vpop.permute.xlu1 %3936 }
 0x859   :  { %v3932_v58 = vpop.permute.xlu0 %3931  ;;  %v763_v59 = vmul.f32 %v4011_v56, %v4005_v45  ;;  %v3939_v60 = vunpack.i.h.bf16 %v3937_v57  ;;  %v3938_v61 = vunpack.i.l.bf16 %v3937_v57  ;;  %v4013_v0 = vpop.eup %4012  ;;  %v340_v56 = vld [vmem:[%s4220_s19 + $0x10] sm:$0xff]  ;;  %v3733_v57 = vpack.c.bf16 %v339_v55, %v338_v54 }
 0x85a   :  { %v3934_v62 = vunpack.i.h.bf16 %v3932_v58  ;;  %v3933_v63 = vunpack.i.l.bf16 %v3932_v58  ;;  %v764_v8 = vmul.f32 %v4013_v0, %v4003_v44  ;;  %v341_v58 = vld [vmem:[%s4220_s19 + $0x18] sm:$0xff]  ;;  %s4766_s19 = sld [smem:[#allocation5_spill]] }
 0x85b   :  { %3463 = vmatprep.mubr.msk.f32.mxu0 %vm542_vm13, %v763_v59  ;;  %v3719_v1 = vpack.c.bf16 %v3939_v60, %v3938_v61  ;;  %v3737_v59 = vpack.c.bf16 %v341_v58, %v340_v56 }
 0x85c   :  { %v3709_v20 = vpack.c.bf16 %v3934_v62, %v3933_v63  ;;  %v3942_v12 = vpop.permute.xlu1 %3941 }
 0x85d   :  { %v3944_v4 = vunpack.i.h.bf16 %v3942_v12  ;;  %v3943_v6 = vunpack.i.l.bf16 %v3942_v12  ;;  %v1053_v17 = vpop.permute.xlu0 %1052 }
 0x85e   :  { %3710 = vmatprep.subr.bf16.mxu0 %v3709_v20 }
 0x85f   :  { %3712 = vmatpush3.bf16.msra.mxu0 %v3709_v20  ;;  %v3723_v15 = vpack.c.bf16 %v3944_v4, %v3943_v6 }
 0x860   :  { %v4015_v7 = vpop.eup %4014  ;;  %3720 = vmatprep.subr.bf16.mxu0 %v3719_v1  ;;  %v1055_v19 = vpop.permute.xlu1 %1054 }
 0x861   :  { %v4017_v9 = vpop.eup %4016  ;;  %v963_v14 = vmul.f32 %v4015_v7, %v4009_v49 }
 0x862   :  { %3464 = vmatmul.mubr.msk.f32.vlgmr.msra.gmra.mrb[2].mxu0 %vm542_vm13, %v764_v8  ;;  %v964_v16 = vmul.f32 %v4017_v9, %v4007_v48 }
 0x863   :  { %3722 = vmatpush3.bf16.msra.mxu0 %v3719_v1  ;;  %3477 = vmatprep.mubr.msk.f32.mxu0 %vm542_vm13, %v963_v14 }
 0x864   :  { %3725 = vmatprep.subr.msk.bf16.mxu0 %vm4399_vm6, %v3723_v15 }
 0x866   :  { %3478 = vmatmul.mubr.msk.f32.vlgmr.msra.gmra.mrb[4].mxu0 %vm542_vm13, %v964_v16 }
 0x867   :  { %3484 = vmatprep.mubr.msk.f32.mxu0 %vm456_vm5, %v1053_v17 }
 0x86c   :  { %3728 = vmatpush3.bf16.xpose.msk.msra.mxu0 %vm4399_vm6, %v3723_v15  ;;  %v3198_v15 = vld [vmem:[%s4225_s24] ss:$0 sm:$0xff]  ;;  %s4767_s24 = sld [smem:[#allocation7_spill]] }
 0x872   :  { %v351_v58 = vld [vmem:[%s4767_s24 + $0x8] sm:$0xff] }
 0x873   :  { %3485 = vmatmul.mubr.msk.f32.vlgmr.msra.gmra.mrb[6].mxu0 %vm456_vm5, %v1055_v19 }
 0x935   :  { %v3465_v21 = vpop.f32.mrb[2].mxu0 }
 0x936   :  { %v843_v26 = vpop.f32.mrb[3].mxu0 }
 0x939   :  { %v3479_v27 = vpop.f32.mrb[4].mxu0 }
 0x93a   :  { %v1043_v28 = vpop.f32.mrb[5].mxu0 }
 0x946   :  { %v3486_v29 = vpop.f32.mrb[6].mxu0 }
 0x947   :  { %v1140_v30 = vadd.f32 %v3486_v29, %v4418_v33  ;;  %v1134_v31 = vpop.f32.mrb[7].mxu0 }
 0x948   :  { %v1135_v32 = vadd.f32 %v1134_v31, %v4420_v22 }
 0x949   :  { %v1146_v34 = vsel %vm542_vm13, %v1140_v30, -inf }
 0x94a   :  { %1147 = vmax.xlane.f32.xlu1 %v1146_v34  ;;  %v1143_v35 = vsel %vm542_vm13, %v1135_v32, -inf }
 0x94b   :  { %1144 = vmax.xlane.f32.xlu0 %v1143_v35 }
 0x95b   :  { %3946 = vrot.lane.b32.xlu1 %v4387_v11, %s4155_s14 }
 0x95f   :  { %1256 = vrot.lane.b32.xlu1 %v3465_v21, %s4156_s15 }
 0x963   :  { %1262 = vrot.lane.b32.xlu1 %v1043_v28, %s4157_s16 }
 0x9d7   :  { %v1148_v36 = vpop.xlane.xlu1 %1147 }
 0x9d8   :  { %v1150_v2 = vsub.f32 %v1140_v30, %v1148_v36  ;;  %v1145_v37 = vpop.xlane.xlu0 %1144 }
 0x9d9   :  { %v1149_v38 = vsub.f32 %v1135_v32, %v1145_v37  ;;  %v346_v37 = vld [vmem:[%s4240_s12 + $0x8] sm:$0xff] }
 0x9da   :  { %v1153_v39 = vmul.f32 1.442695, %v1150_v2  ;;  %v345_v2 = vld [vmem:[%s4240_s12] sm:$0xff] }
 0x9db   :  { %v1151_v40 = vmul.f32 1.442695, %v1149_v38  ;;  %v3947_v41 = vpop.permute.xlu1 %3946  ;;  %v3741_v38 = vpack.c.bf16 %v346_v37, %v345_v2 }
 0x9dc   :  { %v3949_v42 = vunpack.i.h.bf16 %v3947_v41  ;;  %v3948_v43 = vunpack.i.l.bf16 %v3947_v41 }
 0x9dd   :  { %4018 = vpow2.f32 %v1151_v40  ;;  %v348_v40 = vld [vmem:[%s4240_s12 + $0x18] sm:$0xff]  ;;  %3742 = vmatprep.subr.bf16.mxu0 %v3741_v38 }
 0x9de   :  { %v3729_v44 = vpack.c.bf16 %v3949_v42, %v3948_v43  ;;  %4020 = vpow2.f32 %v1153_v39  ;;  %v347_v39 = vld [vmem:[%s4240_s12 + $0x10] sm:$0xff]  ;;  %3744 = vmatpush3.bf16.msra.mxu0 %v3741_v38  ;;  %s4769_s12 = sld [smem:[#allocation8_spill]] }
 0x9df   :  { %v1257_v63 = vpop.permute.xlu1 %1256  ;;  %v3745_v41 = vpack.c.bf16 %v348_v40, %v347_v39 }
 0x9e0   :  { %3730 = vmatprep.subr.bf16.mxu1 %v3729_v44  ;;  %v1277_v4 = vsel %vm456_vm5, %v4456_v10, %v1257_v63  ;;  %v354_v63 = vld [vmem:[%s4767_s24 + $0x20] sm:$0xff] }
 0x9e1   :  { %3732 = vmatpush3.bf16.msra.mxu1 %v3729_v44  ;;  %3746 = vmatprep.subr.bf16.mxu0 %v3745_v41 }
 0x9e2   :  { %3734 = vmatprep.subr.bf16.mxu1 %v3733_v57  ;;  %3748 = vmatpush3.bf16.msra.mxu0 %v3745_v41 }
 0x9e3   :  { %v1263_v12 = vpop.permute.xlu1 %1262 }
 0x9e7   :  { %v4019_v11 = vpop.eup %4018 }
 0x9e8   :  { %v1155_v45 = vsel %vm542_vm13, %v4019_v11, 0.0  ;;  %v4021_v46 = vpop.eup %4020 }
 0x9e9   :  { %1156 = vadd.xlane.f32.xlu0 %v1155_v45  ;;  %v1158_v47 = vsel %vm542_vm13, %v4021_v46, 0.0 }
 0x9ed   :  { %1159 = vadd.xlane.f32.xlu0 %v1158_v47 }
 0xa03   :  { %1254 = vrot.lane.b32.xlu0 %v843_v26, %s4156_s15 }
 0xa07   :  { %1264 = vrot.lane.b32.xlu0 %v3479_v27, %s4157_s16 }
 0xa76   :  { %v1157_v48 = vpop.xlane.xlu0 %1156 }
 0xa77   :  { %4022 = vrcp.f32 %v1157_v48  ;;  %v3201_v48 = vld [vmem:[%s4230_s30] ss:$0 sm:$0xff]  ;;  %s4768_s30 = sld [smem:[#allocation6_spill]] }
 0xa7a   :  { %v1160_v49 = vpop.xlane.xlu0 %1159 }
 0xa7b   :  { %4024 = vrcp.f32 %v1160_v49 }
 0xa7e   :  { %v1255_v62 = vpop.permute.xlu0 %1254 }
 0xa7f   :  { %v1276_v0 = vsel %vm456_vm5, %v4458_v13, %v1255_v62 }
 0xa80   :  { %v1278_v7 = vsel %vm542_vm13, %v1276_v0, %v1263_v12  ;;  %v356_v0 = vld [vmem:[%s4767_s24 + $0x30] sm:$0xff] }
 0xa81   :  { %v4023_v50 = vpop.eup %4022 }
 0xa82   :  { %v1163_v51 = vmul.f32 %v4023_v50, %v4019_v11  ;;  %v1265_v20 = vpop.permute.xlu0 %1264 }
 0xa83   :  { %v1279_v8 = vsel %vm542_vm13, %v1277_v4, %v1265_v20  ;;  %v355_v20 = vld [vmem:[%s4767_s24 + $0x28] sm:$0xff] }
 0xa84   :  { %3491 = vmatprep.mubr.msk.f32.mxu1 %vm542_vm13, %v1163_v51  ;;  %v3757_v12 = vpack.c.bf16 %v355_v20, %v354_v63 }
 0xa85   :  { %v4025_v52 = vpop.eup %4024 }
 0xa86   :  { %v1164_v53 = vmul.f32 %v4025_v52, %v4021_v46  ;;  %v3202_v52 = vld [vmem:[%s4766_s19] ss:$0 sm:$0xff] }
 0xa88   :  { %3492 = vmatmul.mubr.msk.f32.vlgmr.msra.gmra.mrb[10].mxu1 %vm542_vm13, %v1164_v53 }
 0xa89   :  { %3736 = vmatpush3.bf16.msra.mxu1 %v3733_v57  ;;  %v350_v57 = vld [vmem:[%s4767_s24] sm:$0xff] }
 0xa8a   :  { %3738 = vmatprep.subr.bf16.mxu1 %v3737_v59 }
 0xa8d   :  { %3740 = vmatpush3.bf16.msra.mxu1 %v3737_v59  ;;  %v3749_v59 = vpack.c.bf16 %v351_v58, %v350_v57  ;;  %v3209_v58 = vld [vmem:[%s4771_s23] ss:$0 sm:$0xff] }
 0xa8f   :  { %3750 = vmatprep.subr.bf16.mxu1 %v3749_v59 }
 0xb5b   :  { %v3493_v60 = vpop.f32.mrb[10].mxu1 }
 0xb5c   :  { %1272 = vrot.lane.b32.xlu0 %v3493_v60, %s4158_s18  ;;  %v1243_v61 = vpop.f32.mrb[11].mxu1  ;;  %v352_v60 = vld [vmem:[%s4767_s24 + $0x10] sm:$0xff] }
 0xb5d   :  { %1270 = vrot.lane.b32.xlu1 %v1243_v61, %s4158_s18  ;;  %v353_v61 = vld [vmem:[%s4767_s24 + $0x18] sm:$0xff] }
 0xb5e   :  { %v3753_v62 = vpack.c.bf16 %v353_v61, %v352_v60 }
 0xbce   :  { %v1273_v1 = vpop.permute.xlu0 %1272 }
 0xbcf   :  { %v1271_v6 = vpop.permute.xlu1 %1270  ;;  %v1282_v14 = vsel %vm1280_vm14, %v1279_v8, %v1273_v1  ;;  %v357_v1 = vld [vmem:[%s4767_s24 + $0x38] sm:$0xff] }
 0xbd0   :  { %v1281_v9 = vsel %vm1280_vm14, %v1278_v7, %v1271_v6  ;;  %v3761_v4 = vpack.c.bf16 %v357_v1, %v356_v0  ;;  %v3203_v6 = vld [vmem:[%s4768_s30] ss:$0 sm:$0xff] }
 0xbd1   :  { %3502 = vmatprep.mubr.msk.f32.mxu1 %vm266_vm4, %v1281_v9  ;;  %v3211_v1 = vld [vmem:[%s4773_s28] ss:$0 sm:$0xff] }
 0xbd2   :  { %3503 = vmatmul.mubr.msk.f32.vlgmr.msra.gmra.mrb[12].mxu1 %vm266_vm4, %v1282_v14 }
 0xbd3   :  { %3752 = vmatpush3.bf16.msra.mxu1 %v3749_v59 }
 0xbd4   :  { %3754 = vmatprep.subr.bf16.mxu1 %v3753_v62 }
 0xbd7   :  { %3756 = vmatpush3.bf16.msra.mxu1 %v3753_v62  ;;  %v3210_v62 = vld [vmem:[%s4772_s26] ss:$0 sm:$0xff] }
 0xbd8   :  { %3758 = vmatprep.subr.bf16.mxu1 %v3757_v12 }
 0xbdb   :  { %3760 = vmatpush3.bf16.msra.mxu1 %v3757_v12 }
 0xbdc   :  { %3762 = vmatprep.subr.bf16.mxu1 %v3761_v4 }
 0xbdf   :  { %3764 = vmatpush3.bf16.msra.mxu1 %v3761_v4 }
 0xca5   :  { %v3504_v13 = vpop.f32.mrb[12].mxu1 }
 0xca6   :  { %v1367_v16 = vadd.f32 %v3504_v13, %v3198_v15  ;;  %v1361_v17 = vpop.f32.mrb[13].mxu1 }
 0xca7   :  { %v1362_v19 = vadd.f32 %v3198_v15, %v1361_v17 }
 0xca8   :  { %v1371_v10 = vadd.f32 %v1367_v16, %v4382_v5 }
 0xca9   :  { %v1370_v21 = vadd.f32 %v1362_v19, %v4378_v3 }
 0xcaa   :  { %v1375_v26 = vsel %vm266_vm4, %v1371_v10, 0.0 }
 0xcab   :  { %1376 = vadd.xlane.f32.xlu0 %v1375_v26  ;;  %v1372_v27 = vsel %vm266_vm4, %v1370_v21, 0.0 }
 0xcac   :  { %1373 = vadd.xlane.f32.xlu1 %v1372_v27 }
 0xd38   :  { %v1377_v28 = vpop.xlane.xlu0 %1376 }
 0xd39   :  { %v1379_v29 = vmul.f32 0.03125, %v1377_v28  ;;  %v1374_v30 = vpop.xlane.xlu1 %1373 }
 0xd3a   :  { %v1378_v31 = vmul.f32 0.03125, %v1374_v30 }
 0xd3b   :  { %v1381_v32 = vsub.f32 %v1371_v10, %v1379_v29  ;;  %v3206_v29 = vld [vmem:[%s4769_s12] ss:$0 sm:$0xff] }
 0xd3c   :  { %v1380_v34 = vsub.f32 %v1370_v21, %v1378_v31 }
 0xd3d   :  { %v1383_v35 = vmul.f32 %v1381_v32, %v1381_v32 }
 0xd3e   :  { %v1382_v5 = vmul.f32 %v1380_v34, %v1380_v34 }
 0xd3f   :  { %v1387_v3 = vsel %vm266_vm4, %v1383_v35, 0.0 }
 0xd40   :  { %1388 = vadd.xlane.f32.xlu1 %v1387_v3  ;;  %v1384_v36 = vsel %vm266_vm4, %v1382_v5, 0.0 }
 0xd41   :  { %1385 = vadd.xlane.f32.xlu0 %v1384_v36 }
 0xdcd   :  { %v1389_v42 = vpop.xlane.xlu1 %1388 }
 0xdce   :  { %v1391_v43 = vmul.f32 0.03125, %v1389_v42  ;;  %v1386_v44 = vpop.xlane.xlu0 %1385 }
 0xdcf   :  { %v1390_v11 = vmul.f32 0.03125, %v1386_v44 }
 0xdd0   :  { %v1393_v45 = vadd.f32 1e-12, %v1391_v43 }
 0xdd1   :  { %v1392_v46 = vadd.f32 1e-12, %v1390_v11 }
 0xdd2   :  { %4026 = vrsqrt.f32 %v1393_v45  ;;  %v1643_v45 = vld [vmem:[%s4770_s22] sm:$0xff] }
 0xdd3   :  { %4028 = vrsqrt.f32 %v1392_v46  ;;  %v1644_v46 = vld [vmem:[%s4770_s22 + $0x8] sm:$0xff] }
 0xddc   :  { %v4027_v47 = vpop.eup %4026 }
 0xddd   :  { %v4029_v49 = vpop.eup %4028  ;;  %v1397_v50 = vmul.f32 %v4027_v47, %v1381_v32  ;;  %v3765_v47 = vpack.c.bf16 %v1644_v46, %v1643_v45 }
 0xdde   :  { %v1396_v51 = vmul.f32 %v4029_v49, %v1380_v34  ;;  %v1646_v49 = vld [vmem:[%s4770_s22 + $0x18] sm:$0xff] }
 0xddf   :  { %v1405_v53 = vmul.f32 %v3201_v48, %v1397_v50  ;;  %3766 = vmatprep.subr.bf16.mxu0 %v3765_v47 }
 0xde0   :  { %v1404_v54 = vmul.f32 %v3201_v48, %v1396_v51  ;;  %v1645_v48 = vld [vmem:[%s4770_s22 + $0x10] sm:$0xff] }
 0xde1   :  { %v1413_v56 = vadd.f32 %v3202_v52, %v1405_v53  ;;  %v3769_v50 = vpack.c.bf16 %v1646_v49, %v1645_v48 }
 0xde2   :  { %v1412_v55 = vadd.f32 %v3202_v52, %v1404_v54 }
 0xde4   :  { %3513 = vmatprep.mubr.msk.f32.mxu0 %vm266_vm4, %v1412_v55 }
 0xde5   :  { %3514 = vmatmul.mubr.msk.f32.vlgmr.msra.gmra.mrb[8].mxu0 %vm266_vm4, %v1413_v56 }
 0xde6   :  { %3768 = vmatpush3.bf16.msra.mxu0 %v3765_v47 }
 0xde7   :  { %3770 = vmatprep.subr.bf16.mxu0 %v3769_v50 }
 0xdea   :  { %3772 = vmatpush3.bf16.msra.mxu0 %v3769_v50 }
 0xeb8   :  { %v3515_v7 = vpop.f32.mrb[8].mxu0 }
 0xeb9   :  { %v1498_v8 = vadd.f32 %v3515_v7, %v3203_v6  ;;  %v1492_v9 = vpop.f32.mrb[9].mxu0 }
 0xeba   :  { %v1493_v14 = vadd.f32 %v3203_v6, %v1492_v9 }
 0xebb   :  { %v1504_v15 = vmul.f32 0.70710677, %v1498_v8  ;;  %v1502_v26 = vmul.f32 0.5, %v1498_v8 }
 0xebc   :  { %v1503_v13 = vmul.f32 0.70710677, %v1493_v14  ;;  %v1501_v10 = vmul.f32 0.5, %v1493_v14 }
 0xebd   :  { %4030 = verf.f32 %v1504_v15 }
 0xebe   :  { %4032 = verf.f32 %v1503_v13 }
 0xec7   :  { %v4031_v16 = vpop.eup %4030 }
 0xec8   :  { %v4033_v17 = vpop.eup %4032  ;;  %v1508_v19 = vadd.f32 1.0, %v4031_v16 }
 0xec9   :  { %v1507_v21 = vadd.f32 1.0, %v4033_v17 }
 0xeca   :  { %v1510_v28 = vmul.f32 %v1508_v19, %v1502_v26 }
 0xecb   :  { %v1509_v27 = vmul.f32 %v1507_v21, %v1501_v10 }
 0xecd   :  { %3532 = vmatprep.mubr.msk.f32.mxu1 %vm1517_vm15, %v1509_v27 }
 0xece   :  { %3533 = vmatmul.mubr.msk.f32.vlgmr.msra.gmra.mrb[14].mxu1 %vm1517_vm15, %v1510_v28 }
 0xfa1   :  { %v3534_v30 = vpop.f32.mrb[14].mxu1 }
 0xfa2   :  { %v1596_v31 = vadd.f32 %v3534_v30, %v3206_v29  ;;  %v1590_v32 = vpop.f32.mrb[15].mxu1 }
 0xfa3   :  { %v1591_v34 = vadd.f32 %v3206_v29, %v1590_v32 }
 0xfa4   :  { %v1600_v35 = vadd.f32 %v1596_v31, %v1413_v56 }
 0xfa5   :  { %v1599_v5 = vadd.f32 %v1591_v34, %v1412_v55 }
 0xfa6   :  { %v1604_v3 = vsel %vm266_vm4, %v1600_v35, 0.0 }
 0xfa7   :  { %1605 = vadd.xlane.f32.xlu1 %v1604_v3  ;;  %v1601_v36 = vsel %vm266_vm4, %v1599_v5, 0.0 }
 0xfa8   :  { %1602 = vadd.xlane.f32.xlu0 %v1601_v36 }
0x1034   :  { %v1606_v2 = vpop.xlane.xlu1 %1605 }
0x1035   :  { %v1608_v37 = vmul.f32 0.03125, %v1606_v2  ;;  %v1603_v38 = vpop.xlane.xlu0 %1602 }
0x1036   :  { %v1607_v39 = vmul.f32 0.03125, %v1603_v38 }
0x1037   :  { %v1610_v40 = vsub.f32 %v1600_v35, %v1608_v37 }
0x1038   :  { %v1609_v41 = vsub.f32 %v1599_v5, %v1607_v39 }
0x1039   :  { %v1612_v42 = vmul.f32 %v1610_v40, %v1610_v40 }
0x103a   :  { %v1611_v43 = vmul.f32 %v1609_v41, %v1609_v41 }
0x103b   :  { %v1616_v44 = vsel %vm266_vm4, %v1612_v42, 0.0 }
0x103c   :  { %1617 = vadd.xlane.f32.xlu1 %v1616_v44  ;;  %v1613_v11 = vsel %vm266_vm4, %v1611_v43, 0.0 }
0x103d   :  { %1614 = vadd.xlane.f32.xlu0 %v1613_v11 }
0x10c9   :  { %v1618_v51 = vpop.xlane.xlu1 %1617 }
0x10ca   :  { %v1620_v52 = vmul.f32 0.03125, %v1618_v51  ;;  %v1615_v53 = vpop.xlane.xlu0 %1614 }
0x10cb   :  { %v1619_v54 = vmul.f32 0.03125, %v1615_v53 }
0x10cc   :  { %v1622_v55 = vadd.f32 1e-12, %v1620_v52 }
0x10cd   :  { %v1621_v56 = vadd.f32 1e-12, %v1619_v54 }
0x10ce   :  { %4034 = vrsqrt.f32 %v1622_v55 }
0x10cf   :  { %4036 = vrsqrt.f32 %v1621_v56 }
0x10d8   :  { %v4035_v57 = vpop.eup %4034 }
0x10d9   :  { %v4037_v59 = vpop.eup %4036  ;;  %v1626_v60 = vmul.f32 %v4035_v57, %v1610_v40 }
0x10da   :  { %v1625_v61 = vmul.f32 %v4037_v59, %v1609_v41 }
0x10db   :  { %v1634_v63 = vmul.f32 %v3209_v58, %v1626_v60 }
0x10dc   :  { %v1633_v20 = vmul.f32 %v3209_v58, %v1625_v61 }
0x10dd   :  { %v4561_v0 = vadd.f32 %v3210_v62, %v1634_v63 }
0x10de   :  { %v4559_v12 = vadd.f32 %v3210_v62, %v1633_v20 }
0x10e0   :  { %3543 = vmatprep.mubr.msk.f32.mxu0 %vm266_vm4, %v4559_v12 }
0x10e1   :  { %3544 = vmatmul.mubr.msk.f32.vlgmr.msra.gmra.mrb[10].mxu0 %vm266_vm4, %v4561_v0 }
0x11b4   :  { %v3545_v4 = vpop.f32.mrb[10].mxu0 }
0x11b5   :  { %v1755_v6 = vadd.f32 %v3545_v4, %v3211_v1  ;;  %v1749_v7 = vpop.f32.mrb[11].mxu0 }
0x11b6   :  { %v1750_v8 = vadd.f32 %v3211_v1, %v1749_v7 }
0x11b7   :  { %v4578_v15 = vmul.f32 0.35355338, %v1755_v6 }
0x11b8   :  { %v4568_v9 = vpack.i.bf16 %v1755_v6, %v1750_v8  ;;  %v4570_v14 = vmul.f32 0.35355338, %v1750_v8 }
0x11ba   :  { %3956 = vrot.lane.b32.xlu1 %v4568_v9, %s4148_s13  ;;  %3951 = vrot.lane.b32.xlu0 %v4568_v9, %s4144_s0  ;;  %s4779_s0 = sld [smem:[#allocation19_spill]]  ;;  %s4782_s13 = sld [smem:[#allocation21_spill]] }
0x11bb   :  { %3550 = vmatprep.mubr.msk.f32.mxu0 %vm456_vm5, %v4570_v14 }
0x11be   :  { %1962 = vrot.lane.b32.xlu0 %v4578_v15, %s4146_s5  ;;  %1960 = vrot.lane.b32.xlu1 %v4570_v14, %s4146_s5  ;;  %s4780_s5 = sld [smem:[#allocation18_spill]] }
0x122c   :  { %v3957_v13 = vpop.permute.xlu1 %3956  ;;  %v3952_v16 = vpop.permute.xlu0 %3951 }
0x122d   :  { %v3959_v17 = vunpack.i.h.bf16 %v3957_v13  ;;  %v3958_v19 = vunpack.i.l.bf16 %v3957_v13  ;;  %v3954_v10 = vunpack.i.h.bf16 %v3952_v16  ;;  %v3953_v21 = vunpack.i.l.bf16 %v3952_v16 }
0x122f   :  { %v3773_v26 = vpack.c.bf16 %v3954_v10, %v3953_v21  ;;  %v3783_v27 = vpack.c.bf16 %v3959_v17, %v3958_v19 }
0x1230   :  { %v1961_v28 = vpop.permute.xlu1 %1960  ;;  %v1963_v29 = vpop.permute.xlu0 %1962 }
0x1231   :  { %3775 = vmatprep.subr.msk.bf16.mxu0 %vm4399_vm6, %v3773_v26 }
0x1232   :  { %3778 = vmatpush3.bf16.xpose.msk.msra.mxu0 %vm4399_vm6, %v3773_v26 }
0x1233   :  { %3785 = vmatprep.subr.msk.bf16.mxu0 %vm4399_vm6, %v3783_v27 }
0x1239   :  { %3551 = vmatmul.mubr.msk.f32.vlgmr.msra.gmra.mrb[12].mxu0 %vm456_vm5, %v4578_v15 }
0x123a   :  { %3788 = vmatpush3.bf16.xpose.msk.msra.mxu0 %vm4399_vm6, %v3783_v27  ;;  %3564 = vmatprep.mubr.msk.f32.mxu0 %vm456_vm5, %v1961_v28 }
0x1241   :  { %3565 = vmatmul.mubr.msk.f32.vlgmr.msra.gmra.mrb[14].mxu0 %vm456_vm5, %v1963_v29 }
0x130c   :  { %v3552_v30 = vpop.f32.mrb[12].mxu0 }
0x130d   :  { %v1848_v31 = vadd.f32 %v3552_v30, %v4418_v33  ;;  %v1842_v32 = vpop.f32.mrb[13].mxu0 }
0x130e   :  { %v1843_v34 = vadd.f32 %v1842_v32, %v4420_v22 }
0x130f   :  { %v1854_v35 = vsel %vm542_vm13, %v1848_v31, -inf }
0x1310   :  { %1855 = vmax.xlane.f32.xlu0 %v1854_v35  ;;  %v1851_v5 = vsel %vm542_vm13, %v1843_v34, -inf }
0x1311   :  { %1852 = vmax.xlane.f32.xlu1 %v1851_v5 }
0x1314   :  { %v3566_v3 = vpop.f32.mrb[14].mxu0 }
0x1315   :  { %v2048_v36 = vadd.f32 %v3566_v3, %v4418_v33  ;;  %v2042_v2 = vpop.f32.mrb[15].mxu0 }
0x1316   :  { %v2043_v37 = vadd.f32 %v2042_v2, %v4420_v22 }
0x1317   :  { %v2054_v38 = vsel %vm542_vm13, %v2048_v36, -inf }
0x1318   :  { %2055 = vmax.xlane.f32.xlu1 %v2054_v38  ;;  %v2051_v39 = vsel %vm542_vm13, %v2043_v37, -inf }
0x1319   :  { %2052 = vmax.xlane.f32.xlu0 %v2051_v39 }
0x139d   :  { %v1856_v40 = vpop.xlane.xlu0 %1855 }
0x139e   :  { %v1858_v41 = vsub.f32 %v1848_v31, %v1856_v40  ;;  %v1853_v42 = vpop.xlane.xlu1 %1852 }
0x139f   :  { %v1857_v43 = vsub.f32 %v1843_v34, %v1853_v42 }
0x13a0   :  { %v1861_v44 = vmul.f32 1.442695, %v1858_v41 }
0x13a1   :  { %v1859_v11 = vmul.f32 1.442695, %v1857_v43 }
0x13a2   :  { %4038 = vpow2.f32 %v1861_v44 }
0x13a3   :  { %4040 = vpow2.f32 %v1859_v11 }
0x13a5   :  { %v2056_v45 = vpop.xlane.xlu1 %2055 }
0x13a6   :  { %v2058_v46 = vsub.f32 %v2048_v36, %v2056_v45  ;;  %v2053_v47 = vpop.xlane.xlu0 %2052 }
0x13a7   :  { %v2057_v48 = vsub.f32 %v2043_v37, %v2053_v47 }
0x13a8   :  { %v2061_v49 = vmul.f32 1.442695, %v2058_v46 }
0x13a9   :  { %v2059_v50 = vmul.f32 1.442695, %v2057_v48 }
0x13aa   :  { %4042 = vpow2.f32 %v2061_v49 }
0x13ab   :  { %4044 = vpow2.f32 %v2059_v50 }
0x13ac   :  { %v4039_v51 = vpop.eup %4038 }
0x13ad   :  { %v4041_v52 = vpop.eup %4040  ;;  %v1866_v53 = vsel %vm542_vm13, %v4039_v51, 0.0 }
0x13ae   :  { %1867 = vadd.xlane.f32.xlu1 %v1866_v53  ;;  %v1863_v54 = vsel %vm542_vm13, %v4041_v52, 0.0 }
0x13af   :  { %1864 = vadd.xlane.f32.xlu0 %v1863_v54 }
0x13b4   :  { %v4043_v55 = vpop.eup %4042 }
0x13b5   :  { %v4045_v56 = vpop.eup %4044  ;;  %v2066_v57 = vsel %vm542_vm13, %v4043_v55, 0.0 }
0x13b6   :  { %2067 = vadd.xlane.f32.xlu1 %v2066_v57  ;;  %v2063_v58 = vsel %vm542_vm13, %v4045_v56, 0.0 }
0x13b7   :  { %2064 = vadd.xlane.f32.xlu0 %v2063_v58 }
0x13c7   :  { %3966 = vrot.lane.b32.xlu1 %v4568_v9, %s4153_s3 }
0x13cb   :  { %3971 = vrot.lane.b32.xlu1 %v4568_v9, %s4149_s17 }
0x13cd   :  { %3961 = vrot.lane.b32.xlu0 %v4568_v9, %s4147_s9  ;;  %s4781_s9 = sld [smem:[#allocation20_spill]] }
0x13cf   :  { %2162 = vrot.lane.b32.xlu1 %v4578_v15, %s4150_s21 }
0x13d1   :  { %2160 = vrot.lane.b32.xlu0 %v4570_v14, %s4150_s21 }
0x143b   :  { %v1868_v60 = vpop.xlane.xlu1 %1867 }
0x143c   :  { %v1865_v59 = vpop.xlane.xlu0 %1864 }
0x143d   :  { %4046 = vrcp.f32 %v1865_v59 }
0x143e   :  { %4048 = vrcp.f32 %v1868_v60 }
0x1443   :  { %v2068_v61 = vpop.xlane.xlu1 %2067 }
0x1444   :  { %v2065_v62 = vpop.xlane.xlu0 %2064 }
0x1445   :  { %4050 = vrcp.f32 %v2065_v62 }
0x1446   :  { %4052 = vrcp.f32 %v2068_v61 }
0x1447   :  { %v4047_v63 = vpop.eup %4046  ;;  %v3967_v20 = vpop.permute.xlu1 %3966 }
0x1448   :  { %v3962_v1 = vpop.permute.xlu0 %3961  ;;  %v1871_v4 = vmul.f32 %v4047_v63, %v4041_v52  ;;  %v3969_v6 = vunpack.i.h.bf16 %v3967_v20  ;;  %v3968_v7 = vunpack.i.l.bf16 %v3967_v20  ;;  %v4049_v19 = vpop.eup %4048 }
0x1449   :  { %v3964_v8 = vunpack.i.h.bf16 %v3962_v1  ;;  %v3963_v13 = vunpack.i.l.bf16 %v3962_v1  ;;  %v1872_v28 = vmul.f32 %v4049_v19, %v4039_v51 }
0x144a   :  { %3557 = vmatprep.mubr.msk.f32.mxu1 %vm542_vm13, %v1871_v4  ;;  %v3789_v10 = vpack.c.bf16 %v3969_v6, %v3968_v7 }
0x144b   :  { %v3779_v16 = vpack.c.bf16 %v3964_v8, %v3963_v13  ;;  %v3972_v17 = vpop.permute.xlu1 %3971 }
0x144c   :  { %v3974_v21 = vunpack.i.h.bf16 %v3972_v17  ;;  %v3973_v26 = vunpack.i.l.bf16 %v3972_v17  ;;  %v2161_v34 = vpop.permute.xlu0 %2160 }
0x144d   :  { %3780 = vmatprep.subr.bf16.mxu1 %v3779_v16 }
0x144e   :  { %3782 = vmatpush3.bf16.msra.mxu1 %v3779_v16  ;;  %v3793_v31 = vpack.c.bf16 %v3974_v21, %v3973_v26 }
0x144f   :  { %v4051_v27 = vpop.eup %4050  ;;  %3790 = vmatprep.subr.bf16.mxu1 %v3789_v10  ;;  %v2163_v35 = vpop.permute.xlu1 %2162 }
0x1450   :  { %v4053_v29 = vpop.eup %4052  ;;  %v2071_v30 = vmul.f32 %v4051_v27, %v4045_v56 }
0x1451   :  { %3558 = vmatmul.mubr.msk.f32.vlgmr.msra.gmra.mrb[16].mxu1 %vm542_vm13, %v1872_v28  ;;  %v2072_v32 = vmul.f32 %v4053_v29, %v4043_v55 }
0x1452   :  { %3792 = vmatpush3.bf16.msra.mxu1 %v3789_v10  ;;  %3571 = vmatprep.mubr.msk.f32.mxu1 %vm542_vm13, %v2071_v30 }
0x1453   :  { %3795 = vmatprep.subr.msk.bf16.mxu1 %vm4399_vm6, %v3793_v31 }
0x1455   :  { %3572 = vmatmul.mubr.msk.f32.vlgmr.msra.gmra.mrb[18].mxu1 %vm542_vm13, %v2072_v32 }
0x1456   :  { %3578 = vmatprep.mubr.msk.f32.mxu1 %vm456_vm5, %v2161_v34 }
0x145b   :  { %3798 = vmatpush3.bf16.xpose.msk.msra.mxu1 %vm4399_vm6, %v3793_v31 }
0x1462   :  { %3579 = vmatmul.mubr.msk.f32.vlgmr.msra.gmra.mrb[20].mxu1 %vm456_vm5, %v2163_v35 }
0x1524   :  { %v4628_v5 = vpop.f32.mrb[16].mxu1 }
0x1525   :  { %v4630_v3 = vpop.f32.mrb[17].mxu1 }
0x1528   :  { %v4632_v36 = vpop.f32.mrb[18].mxu1 }
0x1529   :  { %v4634_v2 = vpop.f32.mrb[19].mxu1 }
0x1535   :  { %v3580_v37 = vpop.f32.mrb[20].mxu1 }
0x1536   :  { %v2248_v38 = vadd.f32 %v3580_v37, %v4418_v33  ;;  %v2242_v39 = vpop.f32.mrb[21].mxu1 }
0x1537   :  { %v2243_v40 = vadd.f32 %v2242_v39, %v4420_v22 }
0x1538   :  { %v2254_v41 = vsel %vm542_vm13, %v2248_v38, -inf }
0x1539   :  { %2255 = vmax.xlane.f32.xlu1 %v2254_v41  ;;  %v2251_v42 = vsel %vm542_vm13, %v2243_v40, -inf  ;;  %v1648_v41 = vld [vmem:[%s4774_s1] sm:$0xff] }
0x153a   :  { %2252 = vmax.xlane.f32.xlu0 %v2251_v42  ;;  %v1649_v42 = vld [vmem:[%s4774_s1 + $0x8] sm:$0xff] }
0x154a   :  { %3976 = vrot.lane.b32.xlu1 %v4568_v9, %s4151_s25 }
0x154e   :  { %2360 = vrot.lane.b32.xlu1 %v4570_v14, %s4154_s8 }
0x1552   :  { %2362 = vrot.lane.b32.xlu1 %v4578_v15, %s4154_s8 }
0x15c6   :  { %v2256_v43 = vpop.xlane.xlu1 %2255 }
0x15c7   :  { %v2258_v44 = vsub.f32 %v2248_v38, %v2256_v43  ;;  %v2253_v11 = vpop.xlane.xlu0 %2252  ;;  %v1650_v43 = vld [vmem:[%s4774_s1 + $0x10] sm:$0xff] }
0x15c8   :  { %v2257_v45 = vsub.f32 %v2243_v40, %v2253_v11 }
0x15c9   :  { %v2261_v46 = vmul.f32 1.442695, %v2258_v44  ;;  %v3813_v44 = vpack.c.bf16 %v1649_v42, %v1648_v41  ;;  %v1660_v41 = vld [vmem:[%s4779_s0] sm:$0xff]  ;;  %v1661_v42 = vld [vmem:[%s4779_s0 + $0x8] sm:$0xff] }
0x15ca   :  { %v2259_v47 = vmul.f32 1.442695, %v2257_v45  ;;  %v3977_v48 = vpop.permute.xlu1 %3976 }
0x15cb   :  { %4054 = vpow2.f32 %v2261_v46  ;;  %v3979_v49 = vunpack.i.h.bf16 %v3977_v48  ;;  %v3978_v50 = vunpack.i.l.bf16 %v3977_v48 }
0x15cc   :  { %4056 = vpow2.f32 %v2259_v47 }
0x15cd   :  { %v3799_v51 = vpack.c.bf16 %v3979_v49, %v3978_v50 }
0x15ce   :  { %v2361_v20 = vpop.permute.xlu1 %2360 }
0x15cf   :  { %3800 = vmatprep.subr.bf16.mxu0 %v3799_v51 }
0x15d0   :  { %3802 = vmatpush3.bf16.msra.mxu0 %v3799_v51 }
0x15d2   :  { %v2363_v1 = vpop.permute.xlu1 %2362 }
0x15d5   :  { %v4055_v52 = vpop.eup %4054 }
0x15d6   :  { %v2266_v14 = vsel %vm542_vm13, %v4055_v52, 0.0  ;;  %v4057_v53 = vpop.eup %4056 }
0x15d7   :  { %2267 = vadd.xlane.f32.xlu0 %v2266_v14  ;;  %v2263_v15 = vsel %vm542_vm13, %v4057_v53, 0.0 }
0x15db   :  { %2264 = vadd.xlane.f32.xlu0 %v2263_v15 }
0x15f1   :  { %3981 = vrot.lane.b32.xlu0 %v4568_v9, %s4152_s29 }
0x1664   :  { %v2268_v54 = vpop.xlane.xlu0 %2267 }
0x1665   :  { %4058 = vrcp.f32 %v2268_v54 }
0x1668   :  { %v2265_v55 = vpop.xlane.xlu0 %2264 }
0x1669   :  { %4060 = vrcp.f32 %v2265_v55 }
0x166c   :  { %v3982_v56 = vpop.permute.xlu0 %3981 }
0x166d   :  { %v3984_v57 = vunpack.i.h.bf16 %v3982_v56  ;;  %v3983_v58 = vunpack.i.l.bf16 %v3982_v56 }
0x166f   :  { %v3803_v59 = vpack.c.bf16 %v3984_v57, %v3983_v58  ;;  %v4059_v60 = vpop.eup %4058  ;;  %v3238_v57 = vld [vmem:[%s4775_s2] ss:$0 sm:$0xff] }
0x1670   :  { %v2272_v63 = vmul.f32 %v4059_v60, %v4055_v52 }
0x1671   :  { %3805 = vmatprep.subr.msk.bf16.mxu0 %vm4399_vm6, %v3803_v59 }
0x1673   :  { %v4061_v61 = vpop.eup %4060 }
0x1674   :  { %v2271_v62 = vmul.f32 %v4061_v61, %v4057_v53 }
0x1676   :  { %3585 = vmatprep.mubr.msk.f32.mxu0 %vm542_vm13, %v2271_v62 }
0x1677   :  { %3586 = vmatmul.mubr.msk.f32.vlgmr.msra.gmra.mrb[16].mxu0 %vm542_vm13, %v2272_v63 }
0x1678   :  { %3808 = vmatpush3.bf16.xpose.msk.msra.mxu0 %vm4399_vm6, %v3803_v59  ;;  %3592 = vmatprep.mubr.msk.f32.mxu0 %vm456_vm5, %v2361_v20 }
0x167f   :  { %3593 = vmatmul.mubr.msk.f32.vlgmr.msra.gmra.mrb[18].mxu0 %vm456_vm5, %v2363_v1 }
0x174a   :  { %v3587_v4 = vpop.f32.mrb[16].mxu0 }
0x174b   :  { %v2351_v6 = vpop.f32.mrb[17].mxu0 }
0x1752   :  { %v3594_v7 = vpop.f32.mrb[18].mxu0 }
0x1753   :  { %v2448_v8 = vadd.f32 %v3594_v7, %v4418_v33  ;;  %v2442_v13 = vpop.f32.mrb[19].mxu0 }
0x1754   :  { %v2443_v16 = vadd.f32 %v2442_v13, %v4420_v22 }
0x1755   :  { %v2454_v17 = vsel %vm542_vm13, %v2448_v8, -inf }
0x1756   :  { %2455 = vmax.xlane.f32.xlu1 %v2454_v17  ;;  %v2451_v19 = vsel %vm542_vm13, %v2443_v16, -inf  ;;  %v1655_v17 = vld [vmem:[%s4776_s7] sm:$0xff] }
0x1757   :  { %2452 = vmax.xlane.f32.xlu0 %v2451_v19  ;;  %v1656_v19 = vld [vmem:[%s4776_s7 + $0x8] sm:$0xff] }
0x1767   :  { %3986 = vrot.lane.b32.xlu1 %v4568_v9, %s4155_s14 }
0x176b   :  { %2564 = vrot.lane.b32.xlu1 %v4632_v36, %s4156_s15 }
0x176f   :  { %2570 = vrot.lane.b32.xlu1 %v2351_v6, %s4157_s16 }
0x17e3   :  { %v2456_v18 = vpop.xlane.xlu1 %2455 }
0x17e4   :  { %v2458_v10 = vsub.f32 %v2448_v8, %v2456_v18  ;;  %v2453_v33 = vpop.xlane.xlu0 %2452  ;;  %v3821_v18 = vpack.c.bf16 %v1656_v19, %v1655_v17 }
0x17e5   :  { %v2457_v21 = vsub.f32 %v2443_v16, %v2453_v33  ;;  %v1658_v33 = vld [vmem:[%s4776_s7 + $0x18] sm:$0xff] }
0x17e6   :  { %v2461_v26 = vmul.f32 1.442695, %v2458_v10  ;;  %v1657_v10 = vld [vmem:[%s4776_s7 + $0x10] sm:$0xff]  ;;  %3822 = vmatprep.subr.bf16.mxu0 %v3821_v18 }
0x17e7   :  { %v2459_v22 = vmul.f32 1.442695, %v2457_v21  ;;  %v3987_v27 = vpop.permute.xlu1 %3986  ;;  %v3825_v21 = vpack.c.bf16 %v1658_v33, %v1657_v10  ;;  %3824 = vmatpush3.bf16.msra.mxu0 %v3821_v18 }
0x17e8   :  { %v3989_v28 = vunpack.i.h.bf16 %v3987_v27  ;;  %v3988_v29 = vunpack.i.l.bf16 %v3987_v27 }
0x17e9   :  { %4062 = vpow2.f32 %v2459_v22  ;;  %3826 = vmatprep.subr.bf16.mxu0 %v3825_v21 }
0x17ea   :  { %v3809_v30 = vpack.c.bf16 %v3989_v28, %v3988_v29  ;;  %4064 = vpow2.f32 %v2461_v26 }
0x17eb   :  { %v2565_v48 = vpop.permute.xlu1 %2564  ;;  %3828 = vmatpush3.bf16.msra.mxu0 %v3825_v21 }
0x17ec   :  { %3810 = vmatprep.subr.bf16.mxu1 %v3809_v30  ;;  %v2585_v14 = vsel %vm456_vm5, %v4628_v5, %v2565_v48  ;;  %v1666_v48 = vld [vmem:[%s4779_s0 + $0x30] sm:$0xff] }
0x17ed   :  { %3812 = vmatpush3.bf16.msra.mxu1 %v3809_v30 }
0x17ee   :  { %3814 = vmatprep.subr.bf16.mxu1 %v3813_v44 }
0x17ef   :  { %v2571_v50 = vpop.permute.xlu1 %2570 }
0x17f3   :  { %v4063_v9 = vpop.eup %4062 }
0x17f4   :  { %v2463_v31 = vsel %vm542_vm13, %v4063_v9, 0.0  ;;  %v4065_v32 = vpop.eup %4064 }
0x17f5   :  { %2464 = vadd.xlane.f32.xlu0 %v2463_v31  ;;  %v2466_v34 = vsel %vm542_vm13, %v4065_v32, 0.0  ;;  %v3241_v31 = vld [vmem:[%s4777_s10] ss:$0 sm:$0xff] }
0x17f9   :  { %2467 = vadd.xlane.f32.xlu0 %v2466_v34 }
0x180f   :  { %2562 = vrot.lane.b32.xlu0 %v4634_v2, %s4156_s15  ;;  %v1651_v2 = vld [vmem:[%s4774_s1 + $0x18] sm:$0xff] }
0x1810   :  { %v3817_v11 = vpack.c.bf16 %v1651_v2, %v1650_v43  ;;  %v3829_v43 = vpack.c.bf16 %v1661_v42, %v1660_v41  ;;  %v1663_v2 = vld [vmem:[%s4779_s0 + $0x18] sm:$0xff] }
0x1813   :  { %2572 = vrot.lane.b32.xlu0 %v3587_v4, %s4157_s16 }
0x1882   :  { %v2465_v35 = vpop.xlane.xlu0 %2464 }
0x1883   :  { %4066 = vrcp.f32 %v2465_v35 }
0x1886   :  { %v2468_v36 = vpop.xlane.xlu0 %2467 }
0x1887   :  { %4068 = vrcp.f32 %v2468_v36  ;;  %v3242_v36 = vld [vmem:[%s4778_s11] ss:$0 sm:$0xff] }
0x188a   :  { %v2563_v47 = vpop.permute.xlu0 %2562 }
0x188b   :  { %v2584_v51 = vsel %vm456_vm5, %v4630_v3, %v2563_v47 }
0x188c   :  { %v2586_v15 = vsel %vm542_vm13, %v2584_v51, %v2571_v50  ;;  %v3243_v51 = vld [vmem:[%s4780_s5] ss:$0 sm:$0xff] }
0x188d   :  { %v4067_v37 = vpop.eup %4066 }
0x188e   :  { %v2471_v38 = vmul.f32 %v4067_v37, %v4063_v9  ;;  %v2573_v49 = vpop.permute.xlu0 %2572 }
0x188f   :  { %v2587_v54 = vsel %vm542_vm13, %v2585_v14, %v2573_v49  ;;  %v1667_v49 = vld [vmem:[%s4779_s0 + $0x38] sm:$0xff] }
0x1890   :  { %3599 = vmatprep.mubr.msk.f32.mxu1 %vm542_vm13, %v2471_v38  ;;  %v3841_v50 = vpack.c.bf16 %v1667_v49, %v1666_v48  ;;  %v3031_v48 = vld [vmem:[%s4330_s27 + $0x18] sm:$0xff] }
0x1891   :  { %v4069_v39 = vpop.eup %4068 }
0x1892   :  { %v2472_v40 = vmul.f32 %v4069_v39, %v4065_v32 }
0x1894   :  { %3600 = vmatmul.mubr.msk.f32.vlgmr.msra.gmra.mrb[22].mxu1 %vm542_vm13, %v2472_v40 }
0x1895   :  { %3816 = vmatpush3.bf16.msra.mxu1 %v3813_v44  ;;  %v1662_v44 = vld [vmem:[%s4779_s0 + $0x10] sm:$0xff] }
0x1896   :  { %3818 = vmatprep.subr.bf16.mxu1 %v3817_v11 }
0x1899   :  { %3820 = vmatpush3.bf16.msra.mxu1 %v3817_v11  ;;  %v3833_v11 = vpack.c.bf16 %v1663_v2, %v1662_v44  ;;  %v3028_v44 = vld [vmem:[%s4330_s27] sm:$0xff]  ;;  %v3029_v2 = vld [vmem:[%s4330_s27 + $0x8] sm:$0xff] }
0x189a   :  { %3830 = vmatprep.subr.bf16.mxu1 %v3829_v43 }
0x1967   :  { %v3601_v45 = vpop.f32.mrb[22].mxu1 }
0x1968   :  { %2580 = vrot.lane.b32.xlu0 %v3601_v45, %s4158_s18  ;;  %v2551_v46 = vpop.f32.mrb[23].mxu1  ;;  %v1664_v45 = vld [vmem:[%s4779_s0 + $0x20] sm:$0xff] }
0x1969   :  { %2578 = vrot.lane.b32.xlu1 %v2551_v46, %s4158_s18  ;;  %v1665_v46 = vld [vmem:[%s4779_s0 + $0x28] sm:$0xff] }
0x196a   :  { %v3837_v47 = vpack.c.bf16 %v1665_v46, %v1664_v45  ;;  %v3849_v46 = vpack.c.bf16 %v3029_v2, %v3028_v44 }
0x19da   :  { %v2581_v52 = vpop.permute.xlu0 %2580 }
0x19db   :  { %v2579_v53 = vpop.permute.xlu1 %2578  ;;  %v2589_v56 = vsel %vm1280_vm14, %v2587_v54, %v2581_v52 }
0x19dc   :  { %v2588_v55 = vsel %vm1280_vm14, %v2586_v15, %v2579_v53 }
0x19dd   :  { %3610 = vmatprep.mubr.msk.f32.mxu1 %vm266_vm4, %v2588_v55 }
0x19de   :  { %3611 = vmatmul.mubr.msk.f32.vlgmr.msra.gmra.mrb[24].mxu1 %vm266_vm4, %v2589_v56 }
0x19df   :  { %3832 = vmatpush3.bf16.msra.mxu1 %v3829_v43 }
0x19e0   :  { %3834 = vmatprep.subr.bf16.mxu1 %v3833_v11 }
0x19e3   :  { %3836 = vmatpush3.bf16.msra.mxu1 %v3833_v11 }
0x19e4   :  { %3838 = vmatprep.subr.bf16.mxu1 %v3837_v47 }
0x19e7   :  { %3840 = vmatpush3.bf16.msra.mxu1 %v3837_v47  ;;  %v3030_v47 = vld [vmem:[%s4330_s27 + $0x10] sm:$0xff] }
0x19e8   :  { %3842 = vmatprep.subr.bf16.mxu1 %v3841_v50 }
0x19eb   :  { %3844 = vmatpush3.bf16.msra.mxu1 %v3841_v50  ;;  %v3253_v50 = vld [vmem:[%s4335_s4] ss:$0 sm:$0xff] }
0x1ab1   :  { %v3612_v58 = vpop.f32.mrb[24].mxu1 }
0x1ab2   :  { %v2674_v3 = vadd.f32 %v3612_v58, %v3238_v57  ;;  %v2668_v59 = vpop.f32.mrb[25].mxu1 }
0x1ab3   :  { %v2669_v60 = vadd.f32 %v3238_v57, %v2668_v59 }
0x1ab4   :  { %v2678_v5 = vadd.f32 %v2674_v3, %v4561_v0 }
0x1ab5   :  { %v2677_v61 = vadd.f32 %v2669_v60, %v4559_v12 }
0x1ab6   :  { %v2682_v62 = vsel %vm266_vm4, %v2678_v5, 0.0 }
0x1ab7   :  { %2683 = vadd.xlane.f32.xlu0 %v2682_v62  ;;  %v2679_v63 = vsel %vm266_vm4, %v2677_v61, 0.0  ;;  %v3246_v62 = vld [vmem:[%s4781_s9] ss:$0 sm:$0xff] }
0x1ab8   :  { %2680 = vadd.xlane.f32.xlu1 %v2679_v63 }
0x1b44   :  { %v2684_v20 = vpop.xlane.xlu0 %2683 }
0x1b45   :  { %v2686_v1 = vmul.f32 0.03125, %v2684_v20  ;;  %v2681_v4 = vpop.xlane.xlu1 %2680 }
0x1b46   :  { %v2685_v6 = vmul.f32 0.03125, %v2681_v4 }
0x1b47   :  { %v2688_v7 = vsub.f32 %v2678_v5, %v2686_v1 }
0x1b48   :  { %v2687_v8 = vsub.f32 %v2677_v61, %v2685_v6 }
0x1b49   :  { %v2690_v13 = vmul.f32 %v2688_v7, %v2688_v7 }
0x1b4a   :  { %v2689_v0 = vmul.f32 %v2687_v8, %v2687_v8 }
0x1b4b   :  { %v2694_v12 = vsel %vm266_vm4, %v2690_v13, 0.0 }
0x1b4c   :  { %2695 = vadd.xlane.f32.xlu1 %v2694_v12  ;;  %v2691_v16 = vsel %vm266_vm4, %v2689_v0, 0.0 }
0x1b4d   :  { %2692 = vadd.xlane.f32.xlu0 %v2691_v16 }
0x1bd9   :  { %v2696_v26 = vpop.xlane.xlu1 %2695 }
0x1bda   :  { %v2698_v22 = vmul.f32 0.03125, %v2696_v26  ;;  %v2693_v27 = vpop.xlane.xlu0 %2692 }
0x1bdb   :  { %v2697_v28 = vmul.f32 0.03125, %v2693_v27 }
0x1bdc   :  { %v2700_v29 = vadd.f32 1e-12, %v2698_v22  ;;  %v4159_v22 = vmov 0.0|0.0  }
0x1bdd   :  { %v2699_v30 = vadd.f32 1e-12, %v2697_v28  ;;  %3845 = vmatprep.subr.bf16.mxu0 %v4159_v22 }
0x1bde   :  { %4070 = vrsqrt.f32 %v2700_v29 }
0x1bdf   :  { %4072 = vrsqrt.f32 %v2699_v30 }
0x1be8   :  { %v4071_v9 = vpop.eup %4070 }
0x1be9   :  { %v4073_v32 = vpop.eup %4072  ;;  %v2704_v34 = vmul.f32 %v4071_v9, %v2688_v7 }
0x1bea   :  { %v2703_v35 = vmul.f32 %v4073_v32, %v2687_v8 }
0x1beb   :  { %v2712_v37 = vmul.f32 %v3241_v31, %v2704_v34  ;;  %v3249_v34 = vld [vmem:[%s4782_s13] ss:$0 sm:$0xff] }
0x1bec   :  { %v2711_v38 = vmul.f32 %v3241_v31, %v2703_v35 }
0x1bed   :  { %v2720_v40 = vadd.f32 %v3242_v36, %v2712_v37 }
0x1bee   :  { %v2719_v39 = vadd.f32 %v3242_v36, %v2711_v38  ;;  %v3250_v38 = vld [vmem:[%s4325_s20] ss:$0 sm:$0xff]  ;;  %s4161_s20 = smov [#allocation2]  }
0x1bef   :  { %s3121_s27 = sshll.u32 %s4161_s20, 4  ;;  %s3122_s27 = int_to_ptr.vmem [resolvable:$true] %s3121_s27 }
0x1bf0   :  { %3621 = vmatprep.mubr.msk.f32.mxu0 %vm266_vm4, %v2719_v39  ;;  %s4084_s17 = scalar_lea.vmem %s3122_s27, 32  ;;  %p4089_p1 = scmp.lt.s32.totalorder %s3122_s27, %s3122_s27 }
0x1bf1   :  { %3622 = vmatmul.mubr.msk.f32.vlgmr.msra.gmra.mrb[20].mxu0 %vm266_vm4, %v2720_v40  ;;  %p4085_p0 = scmp.ne.s32.totalorder %s3122_s27, %s4084_s17  ;;  %p4090_p2 = scmp.lt.s32.totalorder %s4084_s17, %s4084_s17 }
0x1bf2   :  { %3647 = vmatprep.mubr.msk.f32.mxu0 %vm4160_vm0, %v4143_v25 }
0x1bf3   :  { %p4091_p3 = por %p4090_p2, %p4089_p1 }
0x1bf5   :  { %p4092_p4 = pnand %p4091_p3, %p4085_p0 }
0x1cc4   :  { %v3623_v52 = vpop.f32.mrb[20].mxu0 }
0x1cc5   :  { %v2805_v14 = vadd.f32 %v3623_v52, %v3243_v51  ;;  %v2799_v53 = vpop.f32.mrb[21].mxu0 }
0x1cc6   :  { %v2800_v15 = vadd.f32 %v3243_v51, %v2799_v53 }
0x1cc7   :  { %v2811_v54 = vmul.f32 0.70710677, %v2805_v14  ;;  %v2809_v60 = vmul.f32 0.5, %v2805_v14 }
0x1cc8   :  { %v2810_v55 = vmul.f32 0.70710677, %v2800_v15  ;;  %v2808_v3 = vmul.f32 0.5, %v2800_v15 }
0x1cc9   :  { %4074 = verf.f32 %v2811_v54 }
0x1cca   :  { %4076 = verf.f32 %v2810_v55 }
0x1cd3   :  { %v4075_v56 = vpop.eup %4074 }
0x1cd4   :  { %v4077_v57 = vpop.eup %4076  ;;  %v2815_v58 = vadd.f32 1.0, %v4075_v56 }
0x1cd5   :  { %v2814_v59 = vadd.f32 1.0, %v4077_v57 }
0x1cd6   :  { %v2817_v61 = vmul.f32 %v2815_v58, %v2809_v60 }
0x1cd7   :  { %v2816_v5 = vmul.f32 %v2814_v59, %v2808_v3 }
0x1cd9   :  { %3640 = vmatprep.mubr.msk.f32.mxu1 %vm1517_vm15, %v2816_v5 }
0x1cda   :  { %3641 = vmatmul.mubr.msk.f32.vlgmr.msra.gmra.mrb[26].mxu1 %vm1517_vm15, %v2817_v61 }
0x1dad   :  { %v3642_v63 = vpop.f32.mrb[26].mxu1 }
0x1dae   :  { %v2902_v20 = vadd.f32 %v3642_v63, %v3246_v62  ;;  %v2896_v1 = vpop.f32.mrb[27].mxu1 }
0x1daf   :  { %v2897_v4 = vadd.f32 %v3246_v62, %v2896_v1 }
0x1db0   :  { %v2906_v6 = vadd.f32 %v2902_v20, %v2720_v40  ;;  %v2951_v40 = vmul.u32 8, %v4413_v24  ;;  %v3852_v24 = vpack.c.bf16 %v3031_v48, %v3030_v47 }
0x1db1   :  { %v2905_v7 = vadd.f32 %v2897_v4, %v2719_v39 }
0x1db2   :  { %v2910_v8 = vsel %vm266_vm4, %v2906_v6, 0.0  ;;  %vm2952_vm1 = vcmp.eq.s32.totalorder %v4360_v23, %v2951_v40 }
0x1db3   :  { %2911 = vadd.xlane.f32.xlu1 %v2910_v8  ;;  %v2907_v13 = vsel %vm266_vm4, %v2905_v7, 0.0  ;;  %v3251_v45 = vsel %vm2952_vm1, 1.0, %v4143_v25 }
0x1db4   :  { %2908 = vadd.xlane.f32.xlu0 %v2907_v13 }
0x1e40   :  { %v2912_v0 = vpop.xlane.xlu1 %2911 }
0x1e41   :  { %v2914_v12 = vmul.f32 0.03125, %v2912_v0  ;;  %v2909_v16 = vpop.xlane.xlu0 %2908 }
0x1e42   :  { %v2913_v17 = vmul.f32 0.03125, %v2909_v16 }
0x1e43   :  { %v2916_v19 = vsub.f32 %v2906_v6, %v2914_v12 }
0x1e44   :  { %v2915_v18 = vsub.f32 %v2905_v7, %v2913_v17 }
0x1e45   :  { %v2918_v10 = vmul.f32 %v2916_v19, %v2916_v19 }
0x1e46   :  { %v2917_v33 = vmul.f32 %v2915_v18, %v2915_v18 }
0x1e47   :  { %v2922_v21 = vsel %vm266_vm4, %v2918_v10, 0.0 }
0x1e48   :  { %2923 = vadd.xlane.f32.xlu1 %v2922_v21  ;;  %v2919_v26 = vsel %vm266_vm4, %v2917_v33, 0.0 }
0x1e49   :  { %2920 = vadd.xlane.f32.xlu0 %v2919_v26 }
0x1ed5   :  { %v2924_v27 = vpop.xlane.xlu1 %2923 }
0x1ed6   :  { %v2926_v28 = vmul.f32 0.03125, %v2924_v27  ;;  %v2921_v29 = vpop.xlane.xlu0 %2920 }
0x1ed7   :  { %v2925_v30 = vmul.f32 0.03125, %v2921_v29 }
0x1ed8   :  { %v2928_v9 = vadd.f32 1e-12, %v2926_v28 }
0x1ed9   :  { %v2927_v31 = vadd.f32 1e-12, %v2925_v30 }
0x1eda   :  { %4078 = vrsqrt.f32 %v2928_v9 }
0x1edb   :  { %4080 = vrsqrt.f32 %v2927_v31 }
0x1ee4   :  { %v4079_v32 = vpop.eup %4078 }
0x1ee5   :  { %v4081_v35 = vpop.eup %4080  ;;  %v2932_v36 = vmul.f32 %v4079_v32, %v2916_v19 }
0x1ee6   :  { %v2931_v37 = vmul.f32 %v4081_v35, %v2915_v18 }
0x1ee7   :  { %v2940_v39 = vmul.f32 %v3249_v34, %v2932_v36 }
0x1ee8   :  { %v2939_v41 = vmul.f32 %v3249_v34, %v2931_v37 }
0x1ee9   :  { %v2948_v42 = vadd.f32 %v3250_v38, %v2940_v39 }
0x1eea   :  { %v2947_v43 = vadd.f32 %v3250_v38, %v2939_v41 }
0x1eec   :  { %v3846_v11 = vpack.c.bf16 %v2948_v42, %v2947_v43 }
0x1eee   :  { %3847 = vmatpush3.bf16.msra.mxu0 %v3846_v11 }
0x1eef   :  { %3848 = vmatprep.subr.bf16.mxu0 %v4159_v22 }
0x1ef1   :  { %3648 = vmatmul.mubr.msk.f32.vlgmr.msra.gmra.mrb[22].mxu0 %vm542_vm13, %v3251_v45 }
0x1ef2   :  { %3850 = vmatpush3.bf16.msra.mxu0 %v3849_v46  ;;  %3658 = vmatprep.mubr.msk.f32.mxu0 %vm4160_vm0, %v4143_v25 }
0x1ef3   :  { %3851 = vmatprep.subr.bf16.mxu0 %v4159_v22 }
0x1ef6   :  { %3853 = vmatpush3.bf16.msra.mxu0 %v3852_v24 }
0x1fc4   :  { %v3024_v23 = vpop.f32.mrb[22].mxu0 }
0x1fc5   :  { %v3649_v49 = vpop.f32.mrb[23].mxu0  ;;  %3659 = vmatmul.mubr.msk.f32.vlgmr.msra.gmra.mrb[24].mxu0 %vm266_vm4, %v3024_v23 }
0x2098   :  { %v3108_v51 = vpop.f32.mrb[24].mxu0 }
0x2099   :  { %v3109_v52 = vadd.f32 %v3253_v50, %v3108_v51  ;;  %v3660_v14 = vpop.f32.mrb[25].mxu0 }
0x209b   :  { %4082 = vtanh.f32 %v3109_v52 }
0x20a5   :  { %v4083_v53 = vpop.eup %4082 }
0x20a6   :  { %3114 = vst.msk [vmem:[#allocation2] sm:$0x3] %vm3113_vm2, %v4083_v53 }
0x20a7   :  { %4095 = shalt.err (!%p4092_p4)
}
0x20a8   :  { %s4096_s4 = scalar_lea.hbm %s4340_s6, 32 }
0x20a9   :  { %p4097_p5 = scmp.ne.s32.totalorder %s4340_s6, %s4096_s4  ;;  %p4100_p6 = scmp.lt.u32.totalorder %s4096_s4, %s4340_s6 }
0x20ab   :  { %p4102_p7 = pnand %p4100_p6, %p4097_p5 }
0x20ad   :  { %4105 = shalt.err (!%p4102_p7)
}
0x20ae   :  { %3124 = dma.vmem_to_hbm [thread:$0]  %s3122_s27, 32, %s4340_s6, [#allocation3]  }
0x20af   :  { %4106 = dma.done.wait [#allocation3], 32  }
0x20b0   :  { %4107 = vsyncadd [#allocation3], 4294967264 }
0x20b1   :  { %3128 = vsyncpa [#allocation3], 1 }

</bundles_post_ra>
